<compile_context>
chip_gen: v6e
topology: v6e:2x2x1
jax: 0.10.0
libtpu: 0.0.40
codegen_flags: <defaults>
</compile_context>

<pallas_src>
import functools

import jax
import jax.numpy as jnp
from jax.experimental import pallas as pl
from jax.experimental.pallas import tpu as pltpu


# ----------------------------------------------------------------------------
# JAX glue: knn selection (data-dependent gather).  Reference-only nn_angle.
# ----------------------------------------------------------------------------
def _pairwise_diff(pts):
    # diff[b, i, n, c] = p_n[c] - p_i[c]
    return pts[:, None, :, :] - pts[:, :, None, :]


def knn_vectors(pts, k):
    """pts: (B, N, C) -> (v_knn (B, N, k, C), nk (B, N, k))."""
    _, N, _ = pts.shape
    diff = _pairwise_diff(pts)                                   # (B, N, N, C)
    d2 = jnp.sum(diff * diff, axis=-1)                           # (B, N, N)
    d2 = d2 + jnp.eye(N, dtype=pts.dtype) * 1e10                 # exclude self
    idx = jnp.argsort(d2, axis=-1)[:, :, :k]                     # (B, N, k)
    neigh = jnp.take_along_axis(pts[:, None, :, :], idx[..., None], axis=2)
    v_knn = neigh - pts[:, :, None, :]                           # (B, N, k, C)
    nk = jnp.linalg.norm(v_knn, axis=-1)                         # (B, N, k)
    return v_knn, nk


def nn_angle(pts, k):
    """Reference-only: materializes the (B, k, N, N) angle tensor."""
    diff = _pairwise_diff(pts)
    v_knn, nk = knn_vectors(pts, k)
    dots = jnp.einsum("bikc,binc->bikn", v_knn, diff)            # (B, N, k, N)
    na = jnp.linalg.norm(diff, axis=-1)                          # (B, N, N)
    cos = dots / (nk[..., None] * na[:, :, None, :] + 1e-8)
    ang = jnp.arccos(jnp.clip(cos, -1.0, 1.0))
    return jnp.transpose(ang, (0, 2, 1, 3))                      # (B, k, N, N)


# ----------------------------------------------------------------------------
# In-kernel arccos: Abramowitz & Stegun 4.4.46, |err| <= 2e-8 on [-1, 1].
# Uses only abs / mul / add / sqrt / max / where (all guaranteed to lower).
# ----------------------------------------------------------------------------
_ACOS_COEFFS = (-0.0012624911, 0.0066700901, -0.0170881256, 0.0308918810,
                -0.0501743046, 0.0889789874, -0.2145988016, 1.5707963050)


def _acos(x):
    ax = jnp.abs(x)
    p = _ACOS_COEFFS[0] * ax + _ACOS_COEFFS[1]
    for c in _ACOS_COEFFS[2:]:
        p = p * ax + c
    r = jnp.sqrt(jnp.maximum(1.0 - ax, 0.0)) * p
    return jnp.where(x >= 0.0, r, jnp.pi - r)


# ----------------------------------------------------------------------------
# Fused Pallas kernel: angles -> normalize -> Linear -> LN -> ReLU -> K-max
# ----------------------------------------------------------------------------
def angle_encoder_kernel(q_ref, ptst_ref, vk_ref, nk_ref, w_ref, p_ref, o_ref):
    # q_ref    : (TM, C)    f32   query points (this row tile)
    # ptst_ref : (C, N)     f32   all points, transposed (lane-dense over N)
    # vk_ref   : (TM, K*C)  f32   knn vectors, flattened (k-major, c-minor)
    # nk_ref   : (TM, K)    f32   knn vector norms
    # w_ref    : (N, D)     bf16  Linear weight
    # p_ref    : (8, D)     f32   row 0 = bias, row 1 = LN gamma, row 2 = LN beta
    # o_ref    : (TM, D)
    TM, C = q_ref.shape
    K = nk_ref.shape[1]

    # Pairwise geometry to all N targets: per-coordinate diff planes + distance.
    diffs = []
    d2 = None
    for c in range(C):
        dc = ptst_ref[c:c + 1, :] - q_ref[:, c:c + 1]            # (TM, N)
        diffs.append(dc)
        d2 = dc * dc if d2 is None else d2 + dc * dc
    na = jnp.sqrt(d2)                                            # (TM, N); 0 on self column

    bias = p_ref[0:1, :]
    gamma = p_ref[1:2, :]
    beta = p_ref[2:3, :]
    w = w_ref[...]

    out = None
    for k in range(K):
        # cos(angle) between the k-th knn vector and every (p_n - p_i).
        dp = None
        for c in range(C):
            t = vk_ref[:, k * C + c:k * C + c + 1] * diffs[c]
            dp = t if dp is None else dp + t
        denom = nk_ref[:, k:k + 1] * na + 1e-8
        ang = _acos(jnp.clip(dp / denom, -1.0, 1.0))             # (TM, N) f32

        # F.normalize(dim=-1) folded into a post-matmul rsqrt scale:
        # (a/||a||) @ W + b == (a @ W) * rsqrt(max(||a||^2, 1e-24)) + b.
        ssq = jnp.sum(ang * ang, axis=-1, keepdims=True)
        inv = jax.lax.rsqrt(jnp.maximum(ssq, 1e-24))

        # Linear(N, D) on the MXU: bf16 operands, f32 accumulation.
        h = jnp.dot(ang.astype(jnp.bfloat16), w,
                    preferred_element_type=jnp.float32)          # (TM, D)
        h = h * inv + bias

        # LayerNorm(D), eps = 1e-5 (biased variance) -> ReLU.
        mu = jnp.mean(h, axis=-1, keepdims=True)
        var = jnp.mean((h - mu) * (h - mu), axis=-1, keepdims=True)
        h = (h - mu) * jax.lax.rsqrt(var + 1e-5)
        h = h * gamma + beta
        h = jnp.maximum(h, 0.0)

        # AdaptiveMaxPool1d(1) over the K neighbours, in registers.
        out = h if out is None else jnp.maximum(out, h)

    o_ref[...] = out.astype(o_ref.dtype)


# ----------------------------------------------------------------------------
# Generation-aware tiling
# ----------------------------------------------------------------------------
def _round_up(x, m):
    return ((x + m - 1) // m) * m


def _vmem_capacity_bytes():
    try:
        return int(pltpu.get_tpu_info().vmem_capacity_bytes)
    except Exception:
        return 64 * 1024 * 1024      # conservative fallback == v7x physical VMEM


def _per_row_bytes(N, C, K):
    # Dominant per-query-row working set: C diff planes + ~5 live (TM, N) f32
    # temporaries + the bf16 matmul operand + tiny double-buffered row inputs.
    return (C + 8) * N * 4 + N * 2 + 2 * (C + K * C + K) * 4


def _pick_row_tile(N, C, K, vmem_cap):
    """Largest multiple-of-16 row tile fitting a generation-aware VMEM budget."""
    # 128 MiB parts (v5e/v6e): up to 96 MiB scoped VMEM; 64 MiB parts (v7x): 48 MiB.
    limit_cap = (96 * 1024 * 1024 if vmem_cap >= 100 * 1024 * 1024
                 else 48 * 1024 * 1024)
    budget = limit_cap // 2
    tm = budget // max(_per_row_bytes(N, C, K), 1)
    tm = min(tm, _round_up(N, 16))               # never more rows than exist
    tm = max(16, (tm // 16) * 16)                # multiple of 16, >= 16
    return int(tm), limit_cap


# ----------------------------------------------------------------------------
# Wrapper
# ----------------------------------------------------------------------------
def angle_encoder_forward(points, W, bias, gamma, beta, angle_k,
                          out_dtype=jnp.float32):
    """points: (B, N, C) -> (B, N, D).  Matches AngleEncoder.forward.
    out_dtype=jnp.bfloat16 halves the output HBM write if the consumer allows."""
    B, N, C = points.shape
    D = W.shape[1]
    K = int(angle_k)

    pts = points.astype(jnp.float32)
    v_knn, nk = knn_vectors(pts, K)                        # (B,N,K,C), (B,N,K) — tiny
    vk_flat = v_knn.reshape(B, N, K * C)
    pts_t = jnp.transpose(pts, (0, 2, 1))                  # (B, C, N): lane-dense targets

    W_bf16 = W.astype(jnp.bfloat16)
    params = (jnp.zeros((8, D), jnp.float32)
              .at[0].set(bias.astype(jnp.float32))
              .at[1].set(gamma.astype(jnp.float32))
              .at[2].set(beta.astype(jnp.float32)))

    TM, limit_cap = _pick_row_tile(N, C, K, _vmem_capacity_bytes())
    # Megacore balance: prefer >= 2 total grid steps (v7x shards parallel axes
    # across its 2 TensorCores).
    if B * pl.cdiv(N, TM) < 2 and TM >= 32:
        TM = max(16, (TM // 2) // 16 * 16)
    Np = _round_up(N, TM)

    if Np != N:
        # Zero-padding the query rows is numerically safe (finite garbage rows,
        # sliced off below); the target/Linear axis stays exactly N everywhere.
        pad = ((0, 0), (0, Np - N), (0, 0))
        pts_rows = jnp.pad(pts, pad)
        vk_flat = jnp.pad(vk_flat, pad)
        nk = jnp.pad(nk, pad)
    else:
        pts_rows = pts

    need = (_per_row_bytes(N, C, K) * TM            # in-kernel working set
            + 2 * (C * N * 4 + TM * D * 4)          # pts^T + double-buffered output
            + N * D * 2 + 8 * D * 4                 # weights + params
            + (4 << 20))                            # compiler-scratch slack
    vmem_limit = int(min(max(need, 32 * 1024 * 1024), limit_cap))

    grid = (B, Np // TM)

    out = pl.pallas_call(
        angle_encoder_kernel,
        out_shape=jax.ShapeDtypeStruct((B, Np, D), out_dtype),
        grid_spec=pltpu.PrefetchScalarGridSpec(
            num_scalar_prefetch=0,
            grid=grid,
            in_specs=[
                pl.BlockSpec((None, TM, C), lambda b, m: (b, m, 0)),      # query rows
                pl.BlockSpec((None, C, N), lambda b, m: (b, 0, 0)),       # all targets (p^T)
                pl.BlockSpec((None, TM, K * C), lambda b, m: (b, m, 0)),  # knn vectors
                pl.BlockSpec((None, TM, K), lambda b, m: (b, m, 0)),      # knn norms
                pl.BlockSpec((N, D), lambda b, m: (0, 0)),                # W (bf16)
                pl.BlockSpec((8, D), lambda b, m: (0, 0)),                # bias/gamma/beta
            ],
            out_specs=pl.BlockSpec((None, TM, D), lambda b, m: (b, m, 0)),
        ),
        compiler_params=pltpu.CompilerParams(
            dimension_semantics=("parallel", "parallel"),
            vmem_limit_bytes=vmem_limit,
        ),
    )(pts_rows, pts_t, vk_flat, nk, W_bf16, params)

    return out[:, :N, :]


# ----------------------------------------------------------------------------
# Pure-JAX reference (full f32, module semantics) for verification
# ----------------------------------------------------------------------------
def reference_forward(points, W, bias, gamma, beta, angle_k):
    a = nn_angle(points, angle_k).astype(jnp.float32)      # (B, K, N, N)
    nrm = jnp.linalg.norm(a, axis=-1, keepdims=True)
    a = a / jnp.maximum(nrm, 1e-12)
    h = a @ W + bias                                       # (B, K, N, D)
    mu = h.mean(-1, keepdims=True)
    var = ((h - mu) ** 2).mean(-1, keepdims=True)
    h = (h - mu) / jnp.sqrt(var + 1e-5) * gamma + beta
    h = jnp.maximum(h, 0.0)
    return h.max(axis=1)                                   # (B, N, D)


if __name__ == "__main__":
    B, N, C = 2, 16, 3
    angle_k = 4
    embed_dim = 32

    key = jax.random.PRNGKey(0)
    kx, kw, kb = jax.random.split(key, 3)

    points = jax.random.normal(kx, (B, N, C), dtype=jnp.float32)

    # Deterministic parameter init (nn.Linear-style uniform; LN gamma=1, beta=0).
    bound = 1.0 / jnp.sqrt(N)
    W = jax.random.uniform(kw, (N, embed_dim), jnp.float32, -bound, bound)
    bias = jax.random.uniform(kb, (embed_dim,), jnp.float32, -bound, bound)
    gamma = jnp.ones((embed_dim,), jnp.float32)
    beta = jnp.zeros((embed_dim,), jnp.float32)

    fwd = jax.jit(functools.partial(angle_encoder_forward, angle_k=angle_k))
    out = fwd(points, W, bias, gamma, beta)
    out = jax.block_until_ready(out)

    ref = reference_forward(points, W, bias, gamma, beta, angle_k)
    assert out.shape == (B, N, embed_dim), out.shape
    # bf16 MXU operands + polynomial arccos (|err| <= 2e-8) -> loosened tolerance.
    assert jnp.allclose(out, ref, rtol=3e-2, atol=3e-2), "mismatch vs reference"

    print("KERNEL_OK")
</pallas_src>

<mosaic_0001>
module attributes {stable_mosaic.version = 11 : i64} {
  func.func @angle_encoder_kernel(%arg0: i32, %arg1: i32, %arg2: memref<1x16x3xf32, #tpu.memory_space<vmem>>, %arg3: memref<1x3x16xf32, #tpu.memory_space<vmem>>, %arg4: memref<1x16x12xf32, #tpu.memory_space<vmem>>, %arg5: memref<1x16x4xf32, #tpu.memory_space<vmem>>, %arg6: memref<16x32xbf16, #tpu.memory_space<vmem>>, %arg7: memref<8x32xf32, #tpu.memory_space<vmem>>, %arg8: memref<1x16x32xf32, #tpu.memory_space<vmem>>) attributes {dimension_semantics = [#tpu.dimension_semantics<parallel>, #tpu.dimension_semantics<parallel>], iteration_bounds = array<i64: 2, 1>, scalar_prefetch = 0 : i64, scratch_operands = 0 : i64, tpu.core_type = #tpu.core_type<tc>, window_params = [{transform_indices = @transform_0, window_bounds = array<i64: 1, 16, 3>}, {transform_indices = @transform_1, window_bounds = array<i64: 1, 3, 16>}, {transform_indices = @transform_2, window_bounds = array<i64: 1, 16, 12>}, {transform_indices = @transform_3, window_bounds = array<i64: 1, 16, 4>}, {pipeline_mode = #tpu.pipeline_mode<synchronous>, transform_indices = @transform_4, window_bounds = array<i64: 16, 32>}, {pipeline_mode = #tpu.pipeline_mode<synchronous>, transform_indices = @transform_5, window_bounds = array<i64: 8, 32>}, {transform_indices = @transform_6, window_bounds = array<i64: 1, 16, 32>}]} {
    %c0 = arith.constant 0 : index
    %c0_0 = arith.constant 0 : index
    %c0_1 = arith.constant 0 : index
    %0 = vector.load %arg3[%c0, %c0_0, %c0_1] : memref<1x3x16xf32, #tpu.memory_space<vmem>>, vector<1x1x16xf32>
    %1 = vector.shape_cast %0 : vector<1x1x16xf32> to vector<1x16xf32>
    %c0_2 = arith.constant 0 : index
    %c0_3 = arith.constant 0 : index
    %c0_4 = arith.constant 0 : index
    %2 = vector.load %arg2[%c0_2, %c0_3, %c0_4] : memref<1x16x3xf32, #tpu.memory_space<vmem>>, vector<1x16x1xf32>
    %3 = vector.shape_cast %2 : vector<1x16x1xf32> to vector<16x1xf32>
    %4 = vector.broadcast %1 : vector<1x16xf32> to vector<16x16xf32>
    %5 = vector.broadcast %3 : vector<16x1xf32> to vector<16x16xf32>
    %6 = arith.subf %4, %5 : vector<16x16xf32>
    %7 = arith.mulf %6, %6 : vector<16x16xf32>
    %c0_5 = arith.constant 0 : index
    %c1 = arith.constant 1 : index
    %c0_6 = arith.constant 0 : index
    %8 = vector.load %arg3[%c0_5, %c1, %c0_6] : memref<1x3x16xf32, #tpu.memory_space<vmem>>, vector<1x1x16xf32>
    %9 = vector.shape_cast %8 : vector<1x1x16xf32> to vector<1x16xf32>
    %c0_7 = arith.constant 0 : index
    %c0_8 = arith.constant 0 : index
    %c1_9 = arith.constant 1 : index
    %10 = vector.load %arg2[%c0_7, %c0_8, %c1_9] : memref<1x16x3xf32, #tpu.memory_space<vmem>>, vector<1x16x1xf32>
    %11 = vector.shape_cast %10 : vector<1x16x1xf32> to vector<16x1xf32>
    %12 = vector.broadcast %9 : vector<1x16xf32> to vector<16x16xf32>
    %13 = vector.broadcast %11 : vector<16x1xf32> to vector<16x16xf32>
    %14 = arith.subf %12, %13 : vector<16x16xf32>
    %15 = arith.mulf %14, %14 : vector<16x16xf32>
    %16 = arith.addf %7, %15 : vector<16x16xf32>
    %c0_10 = arith.constant 0 : index
    %c2 = arith.constant 2 : index
    %c0_11 = arith.constant 0 : index
    %17 = vector.load %arg3[%c0_10, %c2, %c0_11] : memref<1x3x16xf32, #tpu.memory_space<vmem>>, vector<1x1x16xf32>
    %18 = vector.shape_cast %17 : vector<1x1x16xf32> to vector<1x16xf32>
    %c0_12 = arith.constant 0 : index
    %c0_13 = arith.constant 0 : index
    %c2_14 = arith.constant 2 : index
    %19 = vector.load %arg2[%c0_12, %c0_13, %c2_14] : memref<1x16x3xf32, #tpu.memory_space<vmem>>, vector<1x16x1xf32>
    %20 = vector.shape_cast %19 : vector<1x16x1xf32> to vector<16x1xf32>
    %21 = vector.broadcast %18 : vector<1x16xf32> to vector<16x16xf32>
    %22 = vector.broadcast %20 : vector<16x1xf32> to vector<16x16xf32>
    %23 = arith.subf %21, %22 : vector<16x16xf32>
    %24 = arith.mulf %23, %23 : vector<16x16xf32>
    %25 = arith.addf %16, %24 : vector<16x16xf32>
    %26 = math.sqrt %25 : vector<16x16xf32>
    %c0_15 = arith.constant 0 : index
    %c0_16 = arith.constant 0 : index
    %27 = vector.load %arg7[%c0_15, %c0_16] : memref<8x32xf32, #tpu.memory_space<vmem>>, vector<1x32xf32>
    %c1_17 = arith.constant 1 : index
    %c0_18 = arith.constant 0 : index
    %28 = vector.load %arg7[%c1_17, %c0_18] : memref<8x32xf32, #tpu.memory_space<vmem>>, vector<1x32xf32>
    %c2_19 = arith.constant 2 : index
    %c0_20 = arith.constant 0 : index
    %29 = vector.load %arg7[%c2_19, %c0_20] : memref<8x32xf32, #tpu.memory_space<vmem>>, vector<1x32xf32>
    %c0_21 = arith.constant 0 : index
    %c0_22 = arith.constant 0 : index
    %30 = vector.load %arg6[%c0_21, %c0_22] : memref<16x32xbf16, #tpu.memory_space<vmem>>, vector<16x32xbf16>
    %c0_23 = arith.constant 0 : index
    %c0_24 = arith.constant 0 : index
    %c0_25 = arith.constant 0 : index
    %31 = vector.load %arg4[%c0_23, %c0_24, %c0_25] : memref<1x16x12xf32, #tpu.memory_space<vmem>>, vector<1x16x1xf32>
    %32 = vector.shape_cast %31 : vector<1x16x1xf32> to vector<16x1xf32>
    %33 = vector.broadcast %32 : vector<16x1xf32> to vector<16x16xf32>
    %34 = arith.mulf %33, %6 : vector<16x16xf32>
    %c0_26 = arith.constant 0 : index
    %c0_27 = arith.constant 0 : index
    %c1_28 = arith.constant 1 : index
    %35 = vector.load %arg4[%c0_26, %c0_27, %c1_28] : memref<1x16x12xf32, #tpu.memory_space<vmem>>, vector<1x16x1xf32>
    %36 = vector.shape_cast %35 : vector<1x16x1xf32> to vector<16x1xf32>
    %37 = vector.broadcast %36 : vector<16x1xf32> to vector<16x16xf32>
    %38 = arith.mulf %37, %14 : vector<16x16xf32>
    %39 = arith.addf %34, %38 : vector<16x16xf32>
    %c0_29 = arith.constant 0 : index
    %c0_30 = arith.constant 0 : index
    %c2_31 = arith.constant 2 : index
    %40 = vector.load %arg4[%c0_29, %c0_30, %c2_31] : memref<1x16x12xf32, #tpu.memory_space<vmem>>, vector<1x16x1xf32>
    %41 = vector.shape_cast %40 : vector<1x16x1xf32> to vector<16x1xf32>
    %42 = vector.broadcast %41 : vector<16x1xf32> to vector<16x16xf32>
    %43 = arith.mulf %42, %23 : vector<16x16xf32>
    %44 = arith.addf %39, %43 : vector<16x16xf32>
    %c0_32 = arith.constant 0 : index
    %c0_33 = arith.constant 0 : index
    %c0_34 = arith.constant 0 : index
    %45 = vector.load %arg5[%c0_32, %c0_33, %c0_34] : memref<1x16x4xf32, #tpu.memory_space<vmem>>, vector<1x16x1xf32>
    %46 = vector.shape_cast %45 : vector<1x16x1xf32> to vector<16x1xf32>
    %47 = vector.broadcast %46 : vector<16x1xf32> to vector<16x16xf32>
    %48 = arith.mulf %47, %26 : vector<16x16xf32>
    %cst = arith.constant 9.99999993E-9 : f32
    %49 = vector.broadcast %cst : f32 to vector<16x16xf32>
    %50 = arith.addf %48, %49 : vector<16x16xf32>
    %51 = arith.divf %44, %50 : vector<16x16xf32>
    %cst_35 = arith.constant -1.000000e+00 : f32
    %cst_36 = arith.constant 1.000000e+00 : f32
    %52 = vector.broadcast %cst_35 : f32 to vector<16x16xf32>
    %53 = arith.maximumf %52, %51 : vector<16x16xf32>
    %54 = vector.broadcast %cst_36 : f32 to vector<16x16xf32>
    %55 = arith.minimumf %54, %53 : vector<16x16xf32>
    %56 = math.absf %55 : vector<16x16xf32>
    %cst_37 = arith.constant -0.0012624911 : f32
    %57 = vector.broadcast %cst_37 : f32 to vector<16x16xf32>
    %58 = arith.mulf %57, %56 : vector<16x16xf32>
    %cst_38 = arith.constant 6.670090e-03 : f32
    %59 = vector.broadcast %cst_38 : f32 to vector<16x16xf32>
    %60 = arith.addf %58, %59 : vector<16x16xf32>
    %61 = arith.mulf %60, %56 : vector<16x16xf32>
    %cst_39 = arith.constant -0.0170881264 : f32
    %62 = vector.broadcast %cst_39 : f32 to vector<16x16xf32>
    %63 = arith.addf %61, %62 : vector<16x16xf32>
    %64 = arith.mulf %63, %56 : vector<16x16xf32>
    %cst_40 = arith.constant 0.0308918804 : f32
    %65 = vector.broadcast %cst_40 : f32 to vector<16x16xf32>
    %66 = arith.addf %64, %65 : vector<16x16xf32>
    %67 = arith.mulf %66, %56 : vector<16x16xf32>
    %cst_41 = arith.constant -0.0501743034 : f32
    %68 = vector.broadcast %cst_41 : f32 to vector<16x16xf32>
    %69 = arith.addf %67, %68 : vector<16x16xf32>
    %70 = arith.mulf %69, %56 : vector<16x16xf32>
    %cst_42 = arith.constant 0.0889789909 : f32
    %71 = vector.broadcast %cst_42 : f32 to vector<16x16xf32>
    %72 = arith.addf %70, %71 : vector<16x16xf32>
    %73 = arith.mulf %72, %56 : vector<16x16xf32>
    %cst_43 = arith.constant -0.214598805 : f32
    %74 = vector.broadcast %cst_43 : f32 to vector<16x16xf32>
    %75 = arith.addf %73, %74 : vector<16x16xf32>
    %76 = arith.mulf %75, %56 : vector<16x16xf32>
    %cst_44 = arith.constant 1.57079625 : f32
    %77 = vector.broadcast %cst_44 : f32 to vector<16x16xf32>
    %78 = arith.addf %76, %77 : vector<16x16xf32>
    %cst_45 = arith.constant 1.000000e+00 : f32
    %79 = vector.broadcast %cst_45 : f32 to vector<16x16xf32>
    %80 = arith.subf %79, %56 : vector<16x16xf32>
    %cst_46 = arith.constant 0.000000e+00 : f32
    %81 = vector.broadcast %cst_46 : f32 to vector<16x16xf32>
    %82 = arith.maximumf %80, %81 : vector<16x16xf32>
    %83 = math.sqrt %82 : vector<16x16xf32>
    %84 = arith.mulf %83, %78 : vector<16x16xf32>
    %cst_47 = arith.constant 0.000000e+00 : f32
    %85 = vector.broadcast %cst_47 : f32 to vector<16x16xf32>
    %86 = arith.cmpf oge, %55, %85 : vector<16x16xf32>
    %cst_48 = arith.constant 3.14159274 : f32
    %87 = vector.broadcast %cst_48 : f32 to vector<16x16xf32>
    %88 = arith.subf %87, %84 : vector<16x16xf32>
    %89 = arith.select %86, %84, %88 : vector<16x16xi1>, vector<16x16xf32>
    %90 = arith.mulf %89, %89 : vector<16x16xf32>
    %cst_49 = arith.constant dense<0.000000e+00> : vector<16xf32>
    %91 = vector.multi_reduction <add>, %90, %cst_49 [1] : vector<16x16xf32> to vector<16xf32>
    %92 = vector.shape_cast %91 : vector<16xf32> to vector<16x1xf32>
    %cst_50 = arith.constant 1.000000e-24 : f32
    %93 = vector.broadcast %cst_50 : f32 to vector<16x1xf32>
    %94 = arith.maximumf %92, %93 : vector<16x1xf32>
    %95 = math.rsqrt %94 : vector<16x1xf32>
    %96 = arith.truncf %89 : vector<16x16xf32> to vector<16x16xbf16>
    %cst_51 = arith.constant dense<0.000000e+00> : vector<16x32xf32>
    %97 = tpu.matmul %96, %30, %cst_51 {dimension_numbers = #tpu.dot_dimension_numbers<[1], [0], [0], [1], [0, 0, 1, 1], [], []>} : vector<16x16xbf16>, vector<16x32xbf16>, vector<16x32xf32> -> vector<16x32xf32>
    %98 = vector.broadcast %95 : vector<16x1xf32> to vector<16x32xf32>
    %99 = arith.mulf %97, %98 : vector<16x32xf32>
    %100 = vector.broadcast %27 : vector<1x32xf32> to vector<16x32xf32>
    %101 = arith.addf %99, %100 : vector<16x32xf32>
    %cst_52 = arith.constant dense<0.000000e+00> : vector<16xf32>
    %102 = vector.multi_reduction <add>, %101, %cst_52 [1] : vector<16x32xf32> to vector<16xf32>
    %103 = vector.shape_cast %102 : vector<16xf32> to vector<16x1xf32>
    %cst_53 = arith.constant 3.200000e+01 : f32
    %104 = vector.broadcast %cst_53 : f32 to vector<16x1xf32>
    %105 = arith.divf %103, %104 : vector<16x1xf32>
    %106 = vector.broadcast %105 : vector<16x1xf32> to vector<16x32xf32>
    %107 = arith.subf %101, %106 : vector<16x32xf32>
    %108 = vector.broadcast %105 : vector<16x1xf32> to vector<16x32xf32>
    %109 = arith.subf %101, %108 : vector<16x32xf32>
    %110 = arith.mulf %107, %109 : vector<16x32xf32>
    %cst_54 = arith.constant dense<0.000000e+00> : vector<16xf32>
    %111 = vector.multi_reduction <add>, %110, %cst_54 [1] : vector<16x32xf32> to vector<16xf32>
    %112 = vector.shape_cast %111 : vector<16xf32> to vector<16x1xf32>
    %cst_55 = arith.constant 3.200000e+01 : f32
    %113 = vector.broadcast %cst_55 : f32 to vector<16x1xf32>
    %114 = arith.divf %112, %113 : vector<16x1xf32>
    %115 = vector.broadcast %105 : vector<16x1xf32> to vector<16x32xf32>
    %116 = arith.subf %101, %115 : vector<16x32xf32>
    %cst_56 = arith.constant 9.99999974E-6 : f32
    %117 = vector.broadcast %cst_56 : f32 to vector<16x1xf32>
    %118 = arith.addf %114, %117 : vector<16x1xf32>
    %119 = math.rsqrt %118 : vector<16x1xf32>
    %120 = vector.broadcast %119 : vector<16x1xf32> to vector<16x32xf32>
    %121 = arith.mulf %116, %120 : vector<16x32xf32>
    %122 = vector.broadcast %28 : vector<1x32xf32> to vector<16x32xf32>
    %123 = arith.mulf %121, %122 : vector<16x32xf32>
    %124 = vector.broadcast %29 : vector<1x32xf32> to vector<16x32xf32>
    %125 = arith.addf %123, %124 : vector<16x32xf32>
    %cst_57 = arith.constant 0.000000e+00 : f32
    %126 = vector.broadcast %cst_57 : f32 to vector<16x32xf32>
    %127 = arith.maximumf %125, %126 : vector<16x32xf32>
    %c0_58 = arith.constant 0 : index
    %c0_59 = arith.constant 0 : index
    %c3 = arith.constant 3 : index
    %128 = vector.load %arg4[%c0_58, %c0_59, %c3] : memref<1x16x12xf32, #tpu.memory_space<vmem>>, vector<1x16x1xf32>
    %129 = vector.shape_cast %128 : vector<1x16x1xf32> to vector<16x1xf32>
    %130 = vector.broadcast %129 : vector<16x1xf32> to vector<16x16xf32>
    %131 = arith.mulf %130, %6 : vector<16x16xf32>
    %c0_60 = arith.constant 0 : index
    %c0_61 = arith.constant 0 : index
    %c4 = arith.constant 4 : index
    %132 = vector.load %arg4[%c0_60, %c0_61, %c4] : memref<1x16x12xf32, #tpu.memory_space<vmem>>, vector<1x16x1xf32>
    %133 = vector.shape_cast %132 : vector<1x16x1xf32> to vector<16x1xf32>
    %134 = vector.broadcast %133 : vector<16x1xf32> to vector<16x16xf32>
    %135 = arith.mulf %134, %14 : vector<16x16xf32>
    %136 = arith.addf %131, %135 : vector<16x16xf32>
    %c0_62 = arith.constant 0 : index
    %c0_63 = arith.constant 0 : index
    %c5 = arith.constant 5 : index
    %137 = vector.load %arg4[%c0_62, %c0_63, %c5] : memref<1x16x12xf32, #tpu.memory_space<vmem>>, vector<1x16x1xf32>
    %138 = vector.shape_cast %137 : vector<1x16x1xf32> to vector<16x1xf32>
    %139 = vector.broadcast %138 : vector<16x1xf32> to vector<16x16xf32>
    %140 = arith.mulf %139, %23 : vector<16x16xf32>
    %141 = arith.addf %136, %140 : vector<16x16xf32>
    %c0_64 = arith.constant 0 : index
    %c0_65 = arith.constant 0 : index
    %c1_66 = arith.constant 1 : index
    %142 = vector.load %arg5[%c0_64, %c0_65, %c1_66] : memref<1x16x4xf32, #tpu.memory_space<vmem>>, vector<1x16x1xf32>
    %143 = vector.shape_cast %142 : vector<1x16x1xf32> to vector<16x1xf32>
    %144 = vector.broadcast %143 : vector<16x1xf32> to vector<16x16xf32>
    %145 = arith.mulf %144, %26 : vector<16x16xf32>
    %cst_67 = arith.constant 9.99999993E-9 : f32
    %146 = vector.broadcast %cst_67 : f32 to vector<16x16xf32>
    %147 = arith.addf %145, %146 : vector<16x16xf32>
    %148 = arith.divf %141, %147 : vector<16x16xf32>
    %cst_68 = arith.constant -1.000000e+00 : f32
    %cst_69 = arith.constant 1.000000e+00 : f32
    %149 = vector.broadcast %cst_68 : f32 to vector<16x16xf32>
    %150 = arith.maximumf %149, %148 : vector<16x16xf32>
    %151 = vector.broadcast %cst_69 : f32 to vector<16x16xf32>
    %152 = arith.minimumf %151, %150 : vector<16x16xf32>
    %153 = math.absf %152 : vector<16x16xf32>
    %cst_70 = arith.constant -0.0012624911 : f32
    %154 = vector.broadcast %cst_70 : f32 to vector<16x16xf32>
    %155 = arith.mulf %154, %153 : vector<16x16xf32>
    %cst_71 = arith.constant 6.670090e-03 : f32
    %156 = vector.broadcast %cst_71 : f32 to vector<16x16xf32>
    %157 = arith.addf %155, %156 : vector<16x16xf32>
    %158 = arith.mulf %157, %153 : vector<16x16xf32>
    %cst_72 = arith.constant -0.0170881264 : f32
    %159 = vector.broadcast %cst_72 : f32 to vector<16x16xf32>
    %160 = arith.addf %158, %159 : vector<16x16xf32>
    %161 = arith.mulf %160, %153 : vector<16x16xf32>
    %cst_73 = arith.constant 0.0308918804 : f32
    %162 = vector.broadcast %cst_73 : f32 to vector<16x16xf32>
    %163 = arith.addf %161, %162 : vector<16x16xf32>
    %164 = arith.mulf %163, %153 : vector<16x16xf32>
    %cst_74 = arith.constant -0.0501743034 : f32
    %165 = vector.broadcast %cst_74 : f32 to vector<16x16xf32>
    %166 = arith.addf %164, %165 : vector<16x16xf32>
    %167 = arith.mulf %166, %153 : vector<16x16xf32>
    %cst_75 = arith.constant 0.0889789909 : f32
    %168 = vector.broadcast %cst_75 : f32 to vector<16x16xf32>
    %169 = arith.addf %167, %168 : vector<16x16xf32>
    %170 = arith.mulf %169, %153 : vector<16x16xf32>
    %cst_76 = arith.constant -0.214598805 : f32
    %171 = vector.broadcast %cst_76 : f32 to vector<16x16xf32>
    %172 = arith.addf %170, %171 : vector<16x16xf32>
    %173 = arith.mulf %172, %153 : vector<16x16xf32>
    %cst_77 = arith.constant 1.57079625 : f32
    %174 = vector.broadcast %cst_77 : f32 to vector<16x16xf32>
    %175 = arith.addf %173, %174 : vector<16x16xf32>
    %cst_78 = arith.constant 1.000000e+00 : f32
    %176 = vector.broadcast %cst_78 : f32 to vector<16x16xf32>
    %177 = arith.subf %176, %153 : vector<16x16xf32>
    %cst_79 = arith.constant 0.000000e+00 : f32
    %178 = vector.broadcast %cst_79 : f32 to vector<16x16xf32>
    %179 = arith.maximumf %177, %178 : vector<16x16xf32>
    %180 = math.sqrt %179 : vector<16x16xf32>
    %181 = arith.mulf %180, %175 : vector<16x16xf32>
    %cst_80 = arith.constant 0.000000e+00 : f32
    %182 = vector.broadcast %cst_80 : f32 to vector<16x16xf32>
    %183 = arith.cmpf oge, %152, %182 : vector<16x16xf32>
    %cst_81 = arith.constant 3.14159274 : f32
    %184 = vector.broadcast %cst_81 : f32 to vector<16x16xf32>
    %185 = arith.subf %184, %181 : vector<16x16xf32>
    %186 = arith.select %183, %181, %185 : vector<16x16xi1>, vector<16x16xf32>
    %187 = arith.mulf %186, %186 : vector<16x16xf32>
    %cst_82 = arith.constant dense<0.000000e+00> : vector<16xf32>
    %188 = vector.multi_reduction <add>, %187, %cst_82 [1] : vector<16x16xf32> to vector<16xf32>
    %189 = vector.shape_cast %188 : vector<16xf32> to vector<16x1xf32>
    %cst_83 = arith.constant 1.000000e-24 : f32
    %190 = vector.broadcast %cst_83 : f32 to vector<16x1xf32>
    %191 = arith.maximumf %189, %190 : vector<16x1xf32>
    %192 = math.rsqrt %191 : vector<16x1xf32>
    %193 = arith.truncf %186 : vector<16x16xf32> to vector<16x16xbf16>
    %cst_84 = arith.constant dense<0.000000e+00> : vector<16x32xf32>
    %194 = tpu.matmul %193, %30, %cst_84 {dimension_numbers = #tpu.dot_dimension_numbers<[1], [0], [0], [1], [0, 0, 1, 1], [], []>} : vector<16x16xbf16>, vector<16x32xbf16>, vector<16x32xf32> -> vector<16x32xf32>
    %195 = vector.broadcast %192 : vector<16x1xf32> to vector<16x32xf32>
    %196 = arith.mulf %194, %195 : vector<16x32xf32>
    %197 = vector.broadcast %27 : vector<1x32xf32> to vector<16x32xf32>
    %198 = arith.addf %196, %197 : vector<16x32xf32>
    %cst_85 = arith.constant dense<0.000000e+00> : vector<16xf32>
    %199 = vector.multi_reduction <add>, %198, %cst_85 [1] : vector<16x32xf32> to vector<16xf32>
    %200 = vector.shape_cast %199 : vector<16xf32> to vector<16x1xf32>
    %cst_86 = arith.constant 3.200000e+01 : f32
    %201 = vector.broadcast %cst_86 : f32 to vector<16x1xf32>
    %202 = arith.divf %200, %201 : vector<16x1xf32>
    %203 = vector.broadcast %202 : vector<16x1xf32> to vector<16x32xf32>
    %204 = arith.subf %198, %203 : vector<16x32xf32>
    %205 = vector.broadcast %202 : vector<16x1xf32> to vector<16x32xf32>
    %206 = arith.subf %198, %205 : vector<16x32xf32>
    %207 = arith.mulf %204, %206 : vector<16x32xf32>
    %cst_87 = arith.constant dense<0.000000e+00> : vector<16xf32>
    %208 = vector.multi_reduction <add>, %207, %cst_87 [1] : vector<16x32xf32> to vector<16xf32>
    %209 = vector.shape_cast %208 : vector<16xf32> to vector<16x1xf32>
    %cst_88 = arith.constant 3.200000e+01 : f32
    %210 = vector.broadcast %cst_88 : f32 to vector<16x1xf32>
    %211 = arith.divf %209, %210 : vector<16x1xf32>
    %212 = vector.broadcast %202 : vector<16x1xf32> to vector<16x32xf32>
    %213 = arith.subf %198, %212 : vector<16x32xf32>
    %cst_89 = arith.constant 9.99999974E-6 : f32
    %214 = vector.broadcast %cst_89 : f32 to vector<16x1xf32>
    %215 = arith.addf %211, %214 : vector<16x1xf32>
    %216 = math.rsqrt %215 : vector<16x1xf32>
    %217 = vector.broadcast %216 : vector<16x1xf32> to vector<16x32xf32>
    %218 = arith.mulf %213, %217 : vector<16x32xf32>
    %219 = vector.broadcast %28 : vector<1x32xf32> to vector<16x32xf32>
    %220 = arith.mulf %218, %219 : vector<16x32xf32>
    %221 = vector.broadcast %29 : vector<1x32xf32> to vector<16x32xf32>
    %222 = arith.addf %220, %221 : vector<16x32xf32>
    %cst_90 = arith.constant 0.000000e+00 : f32
    %223 = vector.broadcast %cst_90 : f32 to vector<16x32xf32>
    %224 = arith.maximumf %222, %223 : vector<16x32xf32>
    %225 = arith.maximumf %127, %224 : vector<16x32xf32>
    %c0_91 = arith.constant 0 : index
    %c0_92 = arith.constant 0 : index
    %c6 = arith.constant 6 : index
    %226 = vector.load %arg4[%c0_91, %c0_92, %c6] : memref<1x16x12xf32, #tpu.memory_space<vmem>>, vector<1x16x1xf32>
    %227 = vector.shape_cast %226 : vector<1x16x1xf32> to vector<16x1xf32>
    %228 = vector.broadcast %227 : vector<16x1xf32> to vector<16x16xf32>
    %229 = arith.mulf %228, %6 : vector<16x16xf32>
    %c0_93 = arith.constant 0 : index
    %c0_94 = arith.constant 0 : index
    %c7 = arith.constant 7 : index
    %230 = vector.load %arg4[%c0_93, %c0_94, %c7] : memref<1x16x12xf32, #tpu.memory_space<vmem>>, vector<1x16x1xf32>
    %231 = vector.shape_cast %230 : vector<1x16x1xf32> to vector<16x1xf32>
    %232 = vector.broadcast %231 : vector<16x1xf32> to vector<16x16xf32>
    %233 = arith.mulf %232, %14 : vector<16x16xf32>
    %234 = arith.addf %229, %233 : vector<16x16xf32>
    %c0_95 = arith.constant 0 : index
    %c0_96 = arith.constant 0 : index
    %c8 = arith.constant 8 : index
    %235 = vector.load %arg4[%c0_95, %c0_96, %c8] : memref<1x16x12xf32, #tpu.memory_space<vmem>>, vector<1x16x1xf32>
    %236 = vector.shape_cast %235 : vector<1x16x1xf32> to vector<16x1xf32>
    %237 = vector.broadcast %236 : vector<16x1xf32> to vector<16x16xf32>
    %238 = arith.mulf %237, %23 : vector<16x16xf32>
    %239 = arith.addf %234, %238 : vector<16x16xf32>
    %c0_97 = arith.constant 0 : index
    %c0_98 = arith.constant 0 : index
    %c2_99 = arith.constant 2 : index
    %240 = vector.load %arg5[%c0_97, %c0_98, %c2_99] : memref<1x16x4xf32, #tpu.memory_space<vmem>>, vector<1x16x1xf32>
    %241 = vector.shape_cast %240 : vector<1x16x1xf32> to vector<16x1xf32>
    %242 = vector.broadcast %241 : vector<16x1xf32> to vector<16x16xf32>
    %243 = arith.mulf %242, %26 : vector<16x16xf32>
    %cst_100 = arith.constant 9.99999993E-9 : f32
    %244 = vector.broadcast %cst_100 : f32 to vector<16x16xf32>
    %245 = arith.addf %243, %244 : vector<16x16xf32>
    %246 = arith.divf %239, %245 : vector<16x16xf32>
    %cst_101 = arith.constant -1.000000e+00 : f32
    %cst_102 = arith.constant 1.000000e+00 : f32
    %247 = vector.broadcast %cst_101 : f32 to vector<16x16xf32>
    %248 = arith.maximumf %247, %246 : vector<16x16xf32>
    %249 = vector.broadcast %cst_102 : f32 to vector<16x16xf32>
    %250 = arith.minimumf %249, %248 : vector<16x16xf32>
    %251 = math.absf %250 : vector<16x16xf32>
    %cst_103 = arith.constant -0.0012624911 : f32
    %252 = vector.broadcast %cst_103 : f32 to vector<16x16xf32>
    %253 = arith.mulf %252, %251 : vector<16x16xf32>
    %cst_104 = arith.constant 6.670090e-03 : f32
    %254 = vector.broadcast %cst_104 : f32 to vector<16x16xf32>
    %255 = arith.addf %253, %254 : vector<16x16xf32>
    %256 = arith.mulf %255, %251 : vector<16x16xf32>
    %cst_105 = arith.constant -0.0170881264 : f32
    %257 = vector.broadcast %cst_105 : f32 to vector<16x16xf32>
    %258 = arith.addf %256, %257 : vector<16x16xf32>
    %259 = arith.mulf %258, %251 : vector<16x16xf32>
    %cst_106 = arith.constant 0.0308918804 : f32
    %260 = vector.broadcast %cst_106 : f32 to vector<16x16xf32>
    %261 = arith.addf %259, %260 : vector<16x16xf32>
    %262 = arith.mulf %261, %251 : vector<16x16xf32>
    %cst_107 = arith.constant -0.0501743034 : f32
    %263 = vector.broadcast %cst_107 : f32 to vector<16x16xf32>
    %264 = arith.addf %262, %263 : vector<16x16xf32>
    %265 = arith.mulf %264, %251 : vector<16x16xf32>
    %cst_108 = arith.constant 0.0889789909 : f32
    %266 = vector.broadcast %cst_108 : f32 to vector<16x16xf32>
    %267 = arith.addf %265, %266 : vector<16x16xf32>
    %268 = arith.mulf %267, %251 : vector<16x16xf32>
    %cst_109 = arith.constant -0.214598805 : f32
    %269 = vector.broadcast %cst_109 : f32 to vector<16x16xf32>
    %270 = arith.addf %268, %269 : vector<16x16xf32>
    %271 = arith.mulf %270, %251 : vector<16x16xf32>
    %cst_110 = arith.constant 1.57079625 : f32
    %272 = vector.broadcast %cst_110 : f32 to vector<16x16xf32>
    %273 = arith.addf %271, %272 : vector<16x16xf32>
    %cst_111 = arith.constant 1.000000e+00 : f32
    %274 = vector.broadcast %cst_111 : f32 to vector<16x16xf32>
    %275 = arith.subf %274, %251 : vector<16x16xf32>
    %cst_112 = arith.constant 0.000000e+00 : f32
    %276 = vector.broadcast %cst_112 : f32 to vector<16x16xf32>
    %277 = arith.maximumf %275, %276 : vector<16x16xf32>
    %278 = math.sqrt %277 : vector<16x16xf32>
    %279 = arith.mulf %278, %273 : vector<16x16xf32>
    %cst_113 = arith.constant 0.000000e+00 : f32
    %280 = vector.broadcast %cst_113 : f32 to vector<16x16xf32>
    %281 = arith.cmpf oge, %250, %280 : vector<16x16xf32>
    %cst_114 = arith.constant 3.14159274 : f32
    %282 = vector.broadcast %cst_114 : f32 to vector<16x16xf32>
    %283 = arith.subf %282, %279 : vector<16x16xf32>
    %284 = arith.select %281, %279, %283 : vector<16x16xi1>, vector<16x16xf32>
    %285 = arith.mulf %284, %284 : vector<16x16xf32>
    %cst_115 = arith.constant dense<0.000000e+00> : vector<16xf32>
    %286 = vector.multi_reduction <add>, %285, %cst_115 [1] : vector<16x16xf32> to vector<16xf32>
    %287 = vector.shape_cast %286 : vector<16xf32> to vector<16x1xf32>
    %cst_116 = arith.constant 1.000000e-24 : f32
    %288 = vector.broadcast %cst_116 : f32 to vector<16x1xf32>
    %289 = arith.maximumf %287, %288 : vector<16x1xf32>
    %290 = math.rsqrt %289 : vector<16x1xf32>
    %291 = arith.truncf %284 : vector<16x16xf32> to vector<16x16xbf16>
    %cst_117 = arith.constant dense<0.000000e+00> : vector<16x32xf32>
    %292 = tpu.matmul %291, %30, %cst_117 {dimension_numbers = #tpu.dot_dimension_numbers<[1], [0], [0], [1], [0, 0, 1, 1], [], []>} : vector<16x16xbf16>, vector<16x32xbf16>, vector<16x32xf32> -> vector<16x32xf32>
    %293 = vector.broadcast %290 : vector<16x1xf32> to vector<16x32xf32>
    %294 = arith.mulf %292, %293 : vector<16x32xf32>
    %295 = vector.broadcast %27 : vector<1x32xf32> to vector<16x32xf32>
    %296 = arith.addf %294, %295 : vector<16x32xf32>
    %cst_118 = arith.constant dense<0.000000e+00> : vector<16xf32>
    %297 = vector.multi_reduction <add>, %296, %cst_118 [1] : vector<16x32xf32> to vector<16xf32>
    %298 = vector.shape_cast %297 : vector<16xf32> to vector<16x1xf32>
    %cst_119 = arith.constant 3.200000e+01 : f32
    %299 = vector.broadcast %cst_119 : f32 to vector<16x1xf32>
    %300 = arith.divf %298, %299 : vector<16x1xf32>
    %301 = vector.broadcast %300 : vector<16x1xf32> to vector<16x32xf32>
    %302 = arith.subf %296, %301 : vector<16x32xf32>
    %303 = vector.broadcast %300 : vector<16x1xf32> to vector<16x32xf32>
    %304 = arith.subf %296, %303 : vector<16x32xf32>
    %305 = arith.mulf %302, %304 : vector<16x32xf32>
    %cst_120 = arith.constant dense<0.000000e+00> : vector<16xf32>
    %306 = vector.multi_reduction <add>, %305, %cst_120 [1] : vector<16x32xf32> to vector<16xf32>
    %307 = vector.shape_cast %306 : vector<16xf32> to vector<16x1xf32>
    %cst_121 = arith.constant 3.200000e+01 : f32
    %308 = vector.broadcast %cst_121 : f32 to vector<16x1xf32>
    %309 = arith.divf %307, %308 : vector<16x1xf32>
    %310 = vector.broadcast %300 : vector<16x1xf32> to vector<16x32xf32>
    %311 = arith.subf %296, %310 : vector<16x32xf32>
    %cst_122 = arith.constant 9.99999974E-6 : f32
    %312 = vector.broadcast %cst_122 : f32 to vector<16x1xf32>
    %313 = arith.addf %309, %312 : vector<16x1xf32>
    %314 = math.rsqrt %313 : vector<16x1xf32>
    %315 = vector.broadcast %314 : vector<16x1xf32> to vector<16x32xf32>
    %316 = arith.mulf %311, %315 : vector<16x32xf32>
    %317 = vector.broadcast %28 : vector<1x32xf32> to vector<16x32xf32>
    %318 = arith.mulf %316, %317 : vector<16x32xf32>
    %319 = vector.broadcast %29 : vector<1x32xf32> to vector<16x32xf32>
    %320 = arith.addf %318, %319 : vector<16x32xf32>
    %cst_123 = arith.constant 0.000000e+00 : f32
    %321 = vector.broadcast %cst_123 : f32 to vector<16x32xf32>
    %322 = arith.maximumf %320, %321 : vector<16x32xf32>
    %323 = arith.maximumf %225, %322 : vector<16x32xf32>
    %c0_124 = arith.constant 0 : index
    %c0_125 = arith.constant 0 : index
    %c9 = arith.constant 9 : index
    %324 = vector.load %arg4[%c0_124, %c0_125, %c9] : memref<1x16x12xf32, #tpu.memory_space<vmem>>, vector<1x16x1xf32>
    %325 = vector.shape_cast %324 : vector<1x16x1xf32> to vector<16x1xf32>
    %326 = vector.broadcast %325 : vector<16x1xf32> to vector<16x16xf32>
    %327 = arith.mulf %326, %6 : vector<16x16xf32>
    %c0_126 = arith.constant 0 : index
    %c0_127 = arith.constant 0 : index
    %c10 = arith.constant 10 : index
    %328 = vector.load %arg4[%c0_126, %c0_127, %c10] : memref<1x16x12xf32, #tpu.memory_space<vmem>>, vector<1x16x1xf32>
    %329 = vector.shape_cast %328 : vector<1x16x1xf32> to vector<16x1xf32>
    %330 = vector.broadcast %329 : vector<16x1xf32> to vector<16x16xf32>
    %331 = arith.mulf %330, %14 : vector<16x16xf32>
    %332 = arith.addf %327, %331 : vector<16x16xf32>
    %c0_128 = arith.constant 0 : index
    %c0_129 = arith.constant 0 : index
    %c11 = arith.constant 11 : index
    %333 = vector.load %arg4[%c0_128, %c0_129, %c11] : memref<1x16x12xf32, #tpu.memory_space<vmem>>, vector<1x16x1xf32>
    %334 = vector.shape_cast %333 : vector<1x16x1xf32> to vector<16x1xf32>
    %335 = vector.broadcast %334 : vector<16x1xf32> to vector<16x16xf32>
    %336 = arith.mulf %335, %23 : vector<16x16xf32>
    %337 = arith.addf %332, %336 : vector<16x16xf32>
    %c0_130 = arith.constant 0 : index
    %c0_131 = arith.constant 0 : index
    %c3_132 = arith.constant 3 : index
    %338 = vector.load %arg5[%c0_130, %c0_131, %c3_132] : memref<1x16x4xf32, #tpu.memory_space<vmem>>, vector<1x16x1xf32>
    %339 = vector.shape_cast %338 : vector<1x16x1xf32> to vector<16x1xf32>
    %340 = vector.broadcast %339 : vector<16x1xf32> to vector<16x16xf32>
    %341 = arith.mulf %340, %26 : vector<16x16xf32>
    %cst_133 = arith.constant 9.99999993E-9 : f32
    %342 = vector.broadcast %cst_133 : f32 to vector<16x16xf32>
    %343 = arith.addf %341, %342 : vector<16x16xf32>
    %344 = arith.divf %337, %343 : vector<16x16xf32>
    %cst_134 = arith.constant -1.000000e+00 : f32
    %cst_135 = arith.constant 1.000000e+00 : f32
    %345 = vector.broadcast %cst_134 : f32 to vector<16x16xf32>
    %346 = arith.maximumf %345, %344 : vector<16x16xf32>
    %347 = vector.broadcast %cst_135 : f32 to vector<16x16xf32>
    %348 = arith.minimumf %347, %346 : vector<16x16xf32>
    %349 = math.absf %348 : vector<16x16xf32>
    %cst_136 = arith.constant -0.0012624911 : f32
    %350 = vector.broadcast %cst_136 : f32 to vector<16x16xf32>
    %351 = arith.mulf %350, %349 : vector<16x16xf32>
    %cst_137 = arith.constant 6.670090e-03 : f32
    %352 = vector.broadcast %cst_137 : f32 to vector<16x16xf32>
    %353 = arith.addf %351, %352 : vector<16x16xf32>
    %354 = arith.mulf %353, %349 : vector<16x16xf32>
    %cst_138 = arith.constant -0.0170881264 : f32
    %355 = vector.broadcast %cst_138 : f32 to vector<16x16xf32>
    %356 = arith.addf %354, %355 : vector<16x16xf32>
    %357 = arith.mulf %356, %349 : vector<16x16xf32>
    %cst_139 = arith.constant 0.0308918804 : f32
    %358 = vector.broadcast %cst_139 : f32 to vector<16x16xf32>
    %359 = arith.addf %357, %358 : vector<16x16xf32>
    %360 = arith.mulf %359, %349 : vector<16x16xf32>
    %cst_140 = arith.constant -0.0501743034 : f32
    %361 = vector.broadcast %cst_140 : f32 to vector<16x16xf32>
    %362 = arith.addf %360, %361 : vector<16x16xf32>
    %363 = arith.mulf %362, %349 : vector<16x16xf32>
    %cst_141 = arith.constant 0.0889789909 : f32
    %364 = vector.broadcast %cst_141 : f32 to vector<16x16xf32>
    %365 = arith.addf %363, %364 : vector<16x16xf32>
    %366 = arith.mulf %365, %349 : vector<16x16xf32>
    %cst_142 = arith.constant -0.214598805 : f32
    %367 = vector.broadcast %cst_142 : f32 to vector<16x16xf32>
    %368 = arith.addf %366, %367 : vector<16x16xf32>
    %369 = arith.mulf %368, %349 : vector<16x16xf32>
    %cst_143 = arith.constant 1.57079625 : f32
    %370 = vector.broadcast %cst_143 : f32 to vector<16x16xf32>
    %371 = arith.addf %369, %370 : vector<16x16xf32>
    %cst_144 = arith.constant 1.000000e+00 : f32
    %372 = vector.broadcast %cst_144 : f32 to vector<16x16xf32>
    %373 = arith.subf %372, %349 : vector<16x16xf32>
    %cst_145 = arith.constant 0.000000e+00 : f32
    %374 = vector.broadcast %cst_145 : f32 to vector<16x16xf32>
    %375 = arith.maximumf %373, %374 : vector<16x16xf32>
    %376 = math.sqrt %375 : vector<16x16xf32>
    %377 = arith.mulf %376, %371 : vector<16x16xf32>
    %cst_146 = arith.constant 0.000000e+00 : f32
    %378 = vector.broadcast %cst_146 : f32 to vector<16x16xf32>
    %379 = arith.cmpf oge, %348, %378 : vector<16x16xf32>
    %cst_147 = arith.constant 3.14159274 : f32
    %380 = vector.broadcast %cst_147 : f32 to vector<16x16xf32>
    %381 = arith.subf %380, %377 : vector<16x16xf32>
    %382 = arith.select %379, %377, %381 : vector<16x16xi1>, vector<16x16xf32>
    %383 = arith.mulf %382, %382 : vector<16x16xf32>
    %cst_148 = arith.constant dense<0.000000e+00> : vector<16xf32>
    %384 = vector.multi_reduction <add>, %383, %cst_148 [1] : vector<16x16xf32> to vector<16xf32>
    %385 = vector.shape_cast %384 : vector<16xf32> to vector<16x1xf32>
    %cst_149 = arith.constant 1.000000e-24 : f32
    %386 = vector.broadcast %cst_149 : f32 to vector<16x1xf32>
    %387 = arith.maximumf %385, %386 : vector<16x1xf32>
    %388 = math.rsqrt %387 : vector<16x1xf32>
    %389 = arith.truncf %382 : vector<16x16xf32> to vector<16x16xbf16>
    %cst_150 = arith.constant dense<0.000000e+00> : vector<16x32xf32>
    %390 = tpu.matmul %389, %30, %cst_150 {dimension_numbers = #tpu.dot_dimension_numbers<[1], [0], [0], [1], [0, 0, 1, 1], [], []>} : vector<16x16xbf16>, vector<16x32xbf16>, vector<16x32xf32> -> vector<16x32xf32>
    %391 = vector.broadcast %388 : vector<16x1xf32> to vector<16x32xf32>
    %392 = arith.mulf %390, %391 : vector<16x32xf32>
    %393 = vector.broadcast %27 : vector<1x32xf32> to vector<16x32xf32>
    %394 = arith.addf %392, %393 : vector<16x32xf32>
    %cst_151 = arith.constant dense<0.000000e+00> : vector<16xf32>
    %395 = vector.multi_reduction <add>, %394, %cst_151 [1] : vector<16x32xf32> to vector<16xf32>
    %396 = vector.shape_cast %395 : vector<16xf32> to vector<16x1xf32>
    %cst_152 = arith.constant 3.200000e+01 : f32
    %397 = vector.broadcast %cst_152 : f32 to vector<16x1xf32>
    %398 = arith.divf %396, %397 : vector<16x1xf32>
    %399 = vector.broadcast %398 : vector<16x1xf32> to vector<16x32xf32>
    %400 = arith.subf %394, %399 : vector<16x32xf32>
    %401 = vector.broadcast %398 : vector<16x1xf32> to vector<16x32xf32>
    %402 = arith.subf %394, %401 : vector<16x32xf32>
    %403 = arith.mulf %400, %402 : vector<16x32xf32>
    %cst_153 = arith.constant dense<0.000000e+00> : vector<16xf32>
    %404 = vector.multi_reduction <add>, %403, %cst_153 [1] : vector<16x32xf32> to vector<16xf32>
    %405 = vector.shape_cast %404 : vector<16xf32> to vector<16x1xf32>
    %cst_154 = arith.constant 3.200000e+01 : f32
    %406 = vector.broadcast %cst_154 : f32 to vector<16x1xf32>
    %407 = arith.divf %405, %406 : vector<16x1xf32>
    %408 = vector.broadcast %398 : vector<16x1xf32> to vector<16x32xf32>
    %409 = arith.subf %394, %408 : vector<16x32xf32>
    %cst_155 = arith.constant 9.99999974E-6 : f32
    %410 = vector.broadcast %cst_155 : f32 to vector<16x1xf32>
    %411 = arith.addf %407, %410 : vector<16x1xf32>
    %412 = math.rsqrt %411 : vector<16x1xf32>
    %413 = vector.broadcast %412 : vector<16x1xf32> to vector<16x32xf32>
    %414 = arith.mulf %409, %413 : vector<16x32xf32>
    %415 = vector.broadcast %28 : vector<1x32xf32> to vector<16x32xf32>
    %416 = arith.mulf %414, %415 : vector<16x32xf32>
    %417 = vector.broadcast %29 : vector<1x32xf32> to vector<16x32xf32>
    %418 = arith.addf %416, %417 : vector<16x32xf32>
    %cst_156 = arith.constant 0.000000e+00 : f32
    %419 = vector.broadcast %cst_156 : f32 to vector<16x32xf32>
    %420 = arith.maximumf %418, %419 : vector<16x32xf32>
    %421 = arith.maximumf %323, %420 : vector<16x32xf32>
    %c0_157 = arith.constant 0 : index
    %c0_158 = arith.constant 0 : index
    %c0_159 = arith.constant 0 : index
    %422 = vector.load %arg8[%c0_157, %c0_158, %c0_159] : memref<1x16x32xf32, #tpu.memory_space<vmem>>, vector<1x16x32xf32>
    %423 = vector.shape_cast %422 : vector<1x16x32xf32> to vector<16x32xf32>
    %424 = vector.shape_cast %421 : vector<16x32xf32> to vector<1x16x32xf32>
    tpu.vector_store %arg8[%c0_157, %c0_158, %c0_159], %424 {strides = array<i32>} : memref<1x16x32xf32, #tpu.memory_space<vmem>>, vector<1x16x32xf32>,
    return
  }
  func.func @transform_0(%arg0: i32, %arg1: i32) -> (i32, i32, i32) {
    %c0_i32 = arith.constant 0 : i32
    %c0_i32_0 = arith.constant 0 : i32
    return %arg0, %arg1, %c0_i32 : i32, i32, i32
  }
  func.func @transform_1(%arg0: i32, %arg1: i32) -> (i32, i32, i32) {
    %c0_i32 = arith.constant 0 : i32
    %c0_i32_0 = arith.constant 0 : i32
    %c0_i32_1 = arith.constant 0 : i32
    return %arg0, %c0_i32, %c0_i32_0 : i32, i32, i32
  }
  func.func @transform_2(%arg0: i32, %arg1: i32) -> (i32, i32, i32) {
    %c0_i32 = arith.constant 0 : i32
    %c0_i32_0 = arith.constant 0 : i32
    return %arg0, %arg1, %c0_i32 : i32, i32, i32
  }
  func.func @transform_3(%arg0: i32, %arg1: i32) -> (i32, i32, i32) {
    %c0_i32 = arith.constant 0 : i32
    %c0_i32_0 = arith.constant 0 : i32
    return %arg0, %arg1, %c0_i32 : i32, i32, i32
  }
  func.func @transform_4(%arg0: i32, %arg1: i32) -> (i32, i32) {
    %c0_i32 = arith.constant 0 : i32
    %c0_i32_0 = arith.constant 0 : i32
    %c0_i32_1 = arith.constant 0 : i32
    return %c0_i32, %c0_i32_0 : i32, i32
  }
  func.func @transform_5(%arg0: i32, %arg1: i32) -> (i32, i32) {
    %c0_i32 = arith.constant 0 : i32
    %c0_i32_0 = arith.constant 0 : i32
    %c0_i32_1 = arith.constant 0 : i32
    return %c0_i32, %c0_i32_0 : i32, i32
  }
  func.func @transform_6(%arg0: i32, %arg1: i32) -> (i32, i32, i32) {
    %c0_i32 = arith.constant 0 : i32
    %c0_i32_0 = arith.constant 0 : i32
    return %arg0, %arg1, %c0_i32 : i32, i32, i32
  }
}

</mosaic_0001>

<bundles_post_ra>
// kernel: angle_encoder_forward.1
= control target key start
LH: loop header
LB: loop body
LE: loop exit
PB: predicated region body
PF: predicated region fallthrough
CT: control target
= control target key end

     0   :  { %11 = vsyncpa [#allocation3], 0  ;;  %s2371_s0 = inlined_call_operand.vmem [shape: f32[2,16,3], index: 0, kind: input, shape index: {}]   ;;  %s2372_s1 = inlined_call_operand.vmem [shape: f32[2,3,16], index: 1, kind: input, shape index: {}]   ;;  %s2373_s2 = inlined_call_operand.vmem [shape: f32[2,16,12], index: 2, kind: input, shape index: {}]   ;;  %s2374_s3 = inlined_call_operand.vmem [shape: f32[2,16,4], index: 3, kind: input, shape index: {}]   ;;  %s2375_s4 = inlined_call_operand.vmem [shape: bf16[16,32], index: 4, kind: input, shape index: {}]   ;;  %s2376_s5 = inlined_call_operand.vmem [shape: f32[8,32], index: 5, kind: input, shape index: {}]   ;;  %s2377_s6 = inlined_call_operand.hbm [shape: f32[2,16,32], index: 6, kind: output, shape index: {}]  }
   0x1   :  { %13 = vsyncpa [#allocation3 + $0x1], 0  ;;  %s1813_s21 = smov 0   ;;  %s1815_s22 = smov 0  }
   0x2   :  { %s1817_s23 = smov 0   ;;  %s1819_s24 = smov 0  }
   0x3   :  { %s1821_s25 = smov 0   ;;  %s1823_s26 = smov 0  }
   0x4 LB: > { %s1441_s27 = sadd.s32 4294967295, %s1759_s26   ;;  %s1442_s28 = sadd.s32 4294967294, %s1759_s26   ;;  %s1759_s26 = sphi %s1823_s26, %s19_s26   ;;  %s1755_s25 = sphi %s1821_s25, %s2388_s25   ;;  %s1751_s24 = sphi %s1819_s24, %s2387_s24   ;;  %s1747_s23 = sphi %s1817_s23, %s2386_s23   ;;  %s1743_s22 = sphi %s1815_s22, %s2385_s22   ;;  %s1739_s21 = sphi %s1813_s21, %s2384_s21  }
   0x5   : > { %s31_s29 = sadd.s32 1, %s1755_s25  ;;  %s192_s30 = sadd.s32 1, %s1747_s23 }
   0x6   : > { %p33_p0 = scmp.ge.s32.totalorder %s31_s29, 2  ;;  %p202_p1 = scmp.ne.s32.totalorder %s1747_s23, %s1743_s22 }
   0x7   : > { %p203_p2 = scmp.eq.s32.totalorder %s1441_s27, 1  ;;  %p208_p3 = scmp.ne.s32.totalorder %s1743_s22, %s1739_s21 }
   0x8   : > { %s2390_s29 = smov (%p33_p0, %s31_s29), 0  ;;  %p209_p5 = scmp.eq.s32.totalorder %s1442_s28, 1 }
   0x9   : > { %p1853_p4 = por %p203_p2, %p202_p1  ;;  %s187_s8 = ssub.s32 %s1755_s25, %s2390_s29 }
   0xa   : > { %p1445_p6 = scmp.ge.s32.totalorder %s1759_s26, 1  ;;  %p190_p7 = scmp.eq.s32.totalorder %s187_s8, 0 }
   0xb   : > { %p1860_p8 = por %p209_p5, %p208_p3  ;;  %p279_p9 = scmp.lt.s32.totalorder %s1759_s26, 3 }
   0xc   : > { %s1866_s10 = scalar_select %p190_p7, %s1747_s23, %s192_s30  }
   0xd   : > { %p280_p10 = pnand %p1445_p6, %p279_p9 }
   0xe   : > { %p336_p11 = scmp.lt.s32.totalorder (!%p280_p10), %s1751_s24, 1  ;;  %s332_s20 = sand.u32 (!%p280_p10), 1, %s1743_s22  }
   0xf   : > { %283 = sbr.rel (%p280_p10) target bundleno = 830 (0x33e), region = 44  ;;  %s1481_s28 = sshll.u32 (!%p280_p10), %s1751_s24, 8 }
  0x14   : > { %v1761_v0 = vmov 1   ;;  %v1762_v1 = vmov 0   ;;  %s1870_s11 = scalar_select %p336_p11, %s1751_s24, 1  ;;  %v1763_v5 = vmov 2   ;;  %v1764_v7 = vmov 3   ;;  %v1898_v18 = vld [vmem:[%s2375_s4] sm:$0xff]  }
  0x15   : > { %1586 = vset.pattern.permute.xlu1 %v1761_v0  ;;  %1585 = vset.pattern.permute.xlu0 %v1762_v1  ;;  %v1765_v10 = vmov 4   ;;  %v1766_v11 = vmov 5   ;;  %v1767_v12 = vmov 7   ;;  %v1768_v13 = vmov 8   ;;  %s2326_s24 = scalar_lea.sflag [#allocation3], %s332_s20 }
  0x16   : > { %s1478_s12 = sshll.u32 %s1870_s11, 4  ;;  %v1769_v14 = vmov 10   ;;  %v1770_v15 = vmov 11   ;;  %v1771_v16 = vmov 6   ;;  %v1772_v17 = vmov 9   ;;  %s1449_s8 = sshll.u32 %s1870_s11, 2 }
  0x17   : > { %s343_s15 = scalar_lea.vmem %s2371_s0, %s1478_s12  ;;  %s367_s18 = scalar_lea.vmem %s2374_s3, %s1478_s12  ;;  %v1773_v19 = vmov 0.0   ;;  %vm1774_vm0 = vmmov 0   ;;  %vm569_vm7 = vcmask 130048  }
  0x18   : > { %v372_v2 = vld [vmem:[%s343_s15] sm:$0xff]  ;;  %v373_v3 = vld [vmem:[%s343_s15 + $0x8] sm:$0xff]  ;;  %s357_s27 = scalar_lea.vmem %s2373_s2, %s1478_s12  ;;  %1490 = vmatprep.subr.bf16.mxu0 %v1773_v19  ;;  %1496 = vmatprep.subr.bf16.mxu1 %v1773_v19  ;;  %s348_s14 = scalar_lea.vmem %s2372_s1, %s1449_s8 }
  0x19   : > { %398 = vperm.xlu1 %1586, %v372_v2   ;;  %380 = vperm.xlu0 %1585, %v372_v2   ;;  %v488_v4 = vld [vmem:[%s367_s18 + $0x8] sm:$0xff]  ;;  %v487_v6 = vld [vmem:[%s367_s18] sm:$0xff]  ;;  %s1775_s15 = smov [#allocation2]  }
  0x1a   : > { %v1882_v8 = vld [vmem:[%s357_s27] sm:$0xff]  ;;  %v450_v9 = vld [vmem:[%s357_s27 + $0x8] sm:$0xff]  ;;  %1491 = vmatpush3.bf16.msra.mxu0 %v1898_v18  ;;  %1497 = vmatpush3.bf16.msra.mxu1 %v1898_v18  ;;  %s1446_s27 = sshll.u32 %s332_s20, 4  ;;  %s1687_s16 = sshll.u32 %s1775_s15, 4  ;;  %s1688_s16 = int_to_ptr.vmem [resolvable:$false] %s1687_s16 }
  0x1b   : > { %1502 = vmatprep.subr.bf16.mxu0 %v1773_v19  ;;  %1492 = vmatprep.mubr.msk.bf16.mxu0 %vm1774_vm0, %v1773_v19  ;;  %v1455_v22 = vld [vmem:[%s348_s14 + $0x1] ss:$0 sm:$0xff]  ;;  %v1454_v23 = vld [vmem:[%s348_s14] ss:$0 sm:$0xff]  ;;  %v1456_v28 = vld [vmem:[%s348_s14 + $0x2] ss:$0 sm:$0xff]  ;;  %s2321_s14 = scalar_lea.hbm %s2377_s6, %s1481_s28 }
  0x1c   : > { %1498 = vmatprep.mubr.msk.bf16.mxu1 %vm1774_vm0, %v1773_v19  ;;  %1508 = vmatprep.subr.bf16.mxu1 %v1773_v19  ;;  %s334_s30 = scalar_lea.vmem [#allocation2], %s1446_s27  ;;  %s1689_s17 = scalar_lea.vmem %s1688_s16, 512 }
  0x1d   : > { %402 = vperm.xlu1 %1586, %v373_v3   ;;  %385 = vperm.xlu0 %1585, %v373_v3   ;;  %s1314_s8 = sshll.u32 %s334_s30, 4  ;;  %s2323_s8 = int_to_ptr.vmem [resolvable:$true] %s1314_s8 }
  0x1e   : > { %s1683_s11 = scalar_lea.vmem %s2323_s8, 256  ;;  %p1690_p1 = scmp.lt.s32.totalorder %s2323_s8, %s1688_s16 }
  0x1f   : > { %p1684_p12 = scmp.ne.s32.totalorder %s2323_s8, %s1683_s11  ;;  %p1691_p2 = scmp.lt.s32.totalorder %s1689_s17, %s1683_s11 }
  0x21   : > { %1587 = vset.pattern.permute.xlu1 %v1763_v5  ;;  %496 = vperm.xlu0 %1585, %v488_v4   ;;  %p1685_p13 = pnand %p1684_p12, %p1853_p4  ;;  %p1692_p3 = por %p1691_p2, %p1690_p1 }
  0x22   : > { %421 = vperm.xlu1 %1587, %v373_v3  }
  0x23   : > { %p1686_p0 = pneg %p1685_p13 }
  0x25   : > { %1592 = vset.pattern.permute.xlu0 %v1764_v7  ;;  %p1693_p5 = pnand %p1692_p3, %p1686_p0 }
  0x26   : > { %1588 = vset.pattern.permute.xlu1 %v1762_v1  ;;  %1130 = vperm.xlu0 %1592, %v488_v4  }
  0x27   : > { %491 = vperm.xlu1 %1588, %v487_v6  }
  0x2a   : > { %1594 = vset.pattern.permute.xlu0 %v1761_v0 }
  0x2b   : > { %1589 = vset.pattern.permute.xlu1 %v1761_v0  ;;  %464 = vperm.xlu0 %1594, %v1882_v8  }
  0x2c   : > { %716 = vperm.xlu1 %1589, %v487_v6  }
  0x2f   : > { %1595 = vset.pattern.permute.xlu0 %v1763_v5 }
  0x30   : > { %720 = vperm.xlu1 %1589, %v488_v4   ;;  %417 = vperm.xlu0 %1595, %v372_v2  }
  0x34   : > { %1590 = vset.pattern.permute.xlu1 %v1763_v5  ;;  %921 = vperm.xlu0 %1595, %v487_v6  }
  0x35   : > { %925 = vperm.xlu1 %1590, %v488_v4  }
  0x38   : > { %480 = vperm.xlu0 %1595, %v450_v9  }
  0x39   : > { %1591 = vset.pattern.permute.xlu1 %v1764_v7 }
  0x3a   : > { %1126 = vperm.xlu1 %1591, %v487_v6  }
  0x3c   : > { %1599 = vset.pattern.permute.xlu0 %v1765_v10 }
  0x3d   : > { %692 = vperm.xlu0 %1599, %v1882_v8  }
  0x3e   : > { %1593 = vset.pattern.permute.xlu1 %v1762_v1 }
  0x3f   : > { %453 = vperm.xlu1 %1593, %v1882_v8  }
  0x41   : > { %1602 = vset.pattern.permute.xlu0 %v1766_v11 }
  0x42   : > { %708 = vperm.xlu0 %1602, %v450_v9  }
  0x43   : > { %458 = vperm.xlu1 %1593, %v450_v9  }
  0x46   : > { %1604 = vset.pattern.permute.xlu0 %v1767_v12 }
  0x47   : > { %1596 = vset.pattern.permute.xlu1 %v1761_v0  ;;  %897 = vperm.xlu0 %1604, %v1882_v8  }
  0x48   : > { %468 = vperm.xlu1 %1596, %v450_v9  }
  0x4b   : > { %1607 = vset.pattern.permute.xlu0 %v1768_v13 }
  0x4c   : > { %1597 = vset.pattern.permute.xlu1 %v1763_v5  ;;  %913 = vperm.xlu0 %1607, %v450_v9  }
  0x4d   : > { %476 = vperm.xlu1 %1597, %v1882_v8  }
  0x50   : > { %1609 = vset.pattern.permute.xlu0 %v1769_v14 }
  0x51   : > { %1598 = vset.pattern.permute.xlu1 %v1764_v7  ;;  %1102 = vperm.xlu0 %1609, %v1882_v8  }
  0x52   : > { %682 = vperm.xlu1 %1598, %v1882_v8  }
  0x55   : > { %1612 = vset.pattern.permute.xlu0 %v1770_v15 }
  0x56   : > { %686 = vperm.xlu1 %1598, %v450_v9   ;;  %1118 = vperm.xlu0 %1612, %v450_v9  }
  0x5a   : > { %1600 = vset.pattern.permute.xlu1 %v1765_v10  ;;  %1613 = vset.pattern.permute.xlu0 %v1764_v7 }
  0x5b   : > { %696 = vperm.xlu1 %1600, %v450_v9  }
  0x5f   : > { %1601 = vset.pattern.permute.xlu1 %v1766_v11 }
  0x60   : > { %704 = vperm.xlu1 %1601, %v1882_v8  }
  0x64   : > { %1603 = vset.pattern.permute.xlu1 %v1771_v16 }
  0x65   : > { %887 = vperm.xlu1 %1603, %v1882_v8  }
  0x69   : > { %891 = vperm.xlu1 %1603, %v450_v9  }
  0x6d   : > { %1605 = vset.pattern.permute.xlu1 %v1767_v12 }
  0x6e   : > { %901 = vperm.xlu1 %1605, %v450_v9  }
  0x72   : > { %1606 = vset.pattern.permute.xlu1 %v1768_v13 }
  0x73   : > { %909 = vperm.xlu1 %1606, %v1882_v8  }
  0x77   : > { %1608 = vset.pattern.permute.xlu1 %v1772_v17 }
  0x78   : > { %1092 = vperm.xlu1 %1608, %v1882_v8  }
  0x7c   : > { %1096 = vperm.xlu1 %1608, %v450_v9  }
  0x80   : > { %1610 = vset.pattern.permute.xlu1 %v1769_v14 }
  0x81   : > { %1106 = vperm.xlu1 %1610, %v450_v9  }
  0x85   : > { %1611 = vset.pattern.permute.xlu1 %v1770_v15 }
  0x86   : > { %1114 = vperm.xlu1 %1611, %v1882_v8  }
  0x94   : > { %v399_v20 = vpop.permute.xlu1 %398  ;;  %v381_v21 = vpop.permute.xlu0 %380 }
  0x95   : > { %v1927_v39 = vsub.f32 %v1455_v22, %v399_v20  ;;  %v1929_v40 = vsub.f32 %v1454_v23, %v381_v21 }
  0x97   : > { %v407_v43 = vmul.f32 %v1927_v39, %v1927_v39  ;;  %v390_v44 = vmul.f32 %v1929_v40, %v1929_v40 }
  0x98   : > { %v403_v24 = vpop.permute.xlu1 %402  ;;  %v386_v25 = vpop.permute.xlu0 %385 }
  0x99   : > { %v1915_v26 = vsub.f32 %v1455_v22, %v403_v24  ;;  %v1917_v27 = vsub.f32 %v1454_v23, %v386_v25  ;;  %v409_v48 = vadd.f32 %v407_v43, %v390_v44 }
  0x9b   : > { %v408_v29 = vmul.f32 %v1915_v26, %v1915_v26  ;;  %v391_v30 = vmul.f32 %v1917_v27, %v1917_v27 }
  0x9c   : > { %v497_v31 = vpop.permute.xlu0 %496 }
  0x9d   : > { %v422_v32 = vpop.permute.xlu1 %421  ;;  %v410_v34 = vadd.f32 %v408_v29, %v391_v30 }
  0x9e   : > { %v1923_v33 = vsub.f32 %v1456_v28, %v422_v32 }
  0xa0   : > { %v427_v35 = vmul.f32 %v1923_v33, %v1923_v33 }
  0xa1   : > { %v1131_v36 = vpop.permute.xlu0 %1130 }
  0xa2   : > { %v429_v37 = vadd.f32 %v427_v35, %v410_v34  ;;  %v492_v38 = vpop.permute.xlu1 %491 }
  0xa4   : > { %1615 = vrsqrt.f32 %v429_v37  ;;  %vm439_vm1 = vcmp.eq.f32.partialorder %v429_v37, inf  ;;  %v442_v54 = vand.u32 2147483648, %v429_v37  ;;  %vm441_vm2 = vcmp.eq.f32.partialorder %v429_v37, 0.0 }
  0xa6   : > { %v465_v41 = vpop.permute.xlu0 %464 }
  0xa7   : > { %v717_v42 = vpop.permute.xlu1 %716  ;;  %v471_v30 = vmul.f32 %v465_v41, %v1927_v39 }
  0xab   : > { %v721_v45 = vpop.permute.xlu1 %720  ;;  %v418_v46 = vpop.permute.xlu0 %417 }
  0xac   : > { %v1935_v47 = vsub.f32 %v1456_v28, %v418_v46 }
  0xae   : > { %v426_v49 = vmul.f32 %v1935_v47, %v1935_v47 }
  0xaf   : > { %v922_v62 = vpop.permute.xlu0 %921 }
  0xb0   : > { %v428_v50 = vadd.f32 %v426_v49, %v409_v48  ;;  %v1939_v51 = vpop.permute.xlu1 %925 }
  0xb1   : > { %v1616_v52 = vpop.eup %1615 }
  0xb2   : > { %v438_v53 = vmul.f32 %v1616_v52, %v429_v37  ;;  %1617 = vrsqrt.f32 %v428_v50  ;;  %vm432_vm3 = vcmp.eq.f32.partialorder %v428_v50, inf  ;;  %v435_v2 = vand.u32 2147483648, %v428_v50 }
  0xb3   : > { %vm434_vm4 = vcmp.eq.f32.partialorder %v428_v50, 0.0  ;;  %v481_v7 = vpop.permute.xlu0 %480 }
  0xb4   : > { %v440_v55 = vsel %vm439_vm1, %v429_v37, %v438_v53  ;;  %v484_v12 = vmul.f32 %v481_v7, %v1923_v33 }
  0xb5   : > { %v1941_v56 = vsel %vm441_vm2, %v442_v54, %v440_v55  ;;  %v1943_v57 = vpop.permute.xlu1 %1126 }
  0xb6   : > { %v500_v58 = vmul.f32 %v497_v31, %v1941_v56  ;;  %v1947_v59 = vmul.f32 %v1131_v36, %v1941_v56  ;;  %v724_v11 = vmul.f32 %v721_v45, %v1941_v56 }
  0xb8   : > { %v502_v60 = vadd.f32 1e-08, %v500_v58  ;;  %v693_v20 = vpop.permute.xlu0 %692  ;;  %v726_v21 = vadd.f32 1e-08, %v724_v11 }
  0xba   : > { %v454_v61 = vpop.permute.xlu1 %453  ;;  %1619 = vrcp.f32 %v502_v60 }
  0xbb   : > { %v461_v28 = vmul.f32 %v454_v61, %v1929_v40  ;;  %v929_v61 = vmul.f32 %v1939_v51, %v1941_v56  ;;  %v1136_v56 = vadd.f32 1e-08, %v1947_v59 }
  0xbd   : > { %v709_v31 = vpop.permute.xlu0 %708  ;;  %v473_v37 = vadd.f32 %v471_v30, %v461_v28 }
  0xbe   : > { %v459_v63 = vpop.permute.xlu1 %458  ;;  %v712_v55 = vmul.f32 %v709_v31, %v1923_v33 }
  0xbf   : > { %v1618_v0 = vpop.eup %1617  ;;  %v462_v8 = vmul.f32 %v459_v63, %v1917_v27  ;;  %v699_v63 = vmul.f32 %v693_v20, %v1927_v39 }
  0xc0   : > { %v431_v1 = vmul.f32 %v1618_v0, %v428_v50 }
  0xc2   : > { %v433_v3 = vsel %vm432_vm3, %v428_v50, %v431_v1  ;;  %v898_v41 = vpop.permute.xlu0 %897 }
  0xc3   : > { %v436_v4 = vsel %vm434_vm4, %v435_v2, %v433_v3  ;;  %v469_v5 = vpop.permute.xlu1 %468 }
  0xc4   : > { %v499_v6 = vmul.f32 %v492_v38, %v436_v4  ;;  %v472_v9 = vmul.f32 %v469_v5, %v1915_v26  ;;  %v723_v17 = vmul.f32 %v717_v42, %v436_v4  ;;  %v928_v1 = vmul.f32 %v922_v62, %v436_v4 }
  0xc5   : > { %v1133_v2 = vmul.f32 %v1943_v57, %v436_v4 }
  0xc6   : > { %v501_v10 = vadd.f32 1e-08, %v499_v6  ;;  %v474_v13 = vadd.f32 %v472_v9, %v462_v8  ;;  %v725_v25 = vadd.f32 1e-08, %v723_v17 }
  0xc7   : > { %v1620_v16 = vpop.eup %1619  ;;  %v914_v8 = vpop.permute.xlu0 %913 }
  0xc8   : > { %1621 = vrcp.f32 %v501_v10  ;;  %v477_v14 = vpop.permute.xlu1 %476  ;;  %v486_v15 = vadd.f32 %v484_v12, %v474_v13  ;;  %v931_v13 = vadd.f32 1e-08, %v929_v61 }
  0xc9   : > { %1623 = vrcp.f32 %v726_v21  ;;  %v483_v32 = vmul.f32 %v477_v14, %v1935_v47  ;;  %v1135_v21 = vadd.f32 1e-08, %v1133_v2 }
  0xca   : > { %v1953_v22 = vmul.f32 %v1620_v16, %v486_v15  ;;  %1625 = vrcp.f32 %v725_v25  ;;  %v930_v16 = vadd.f32 1e-08, %v928_v1 }
  0xcb   : > { %v485_v43 = vadd.f32 %v483_v32, %v473_v37  ;;  %v904_v32 = vmul.f32 %v898_v41, %v1927_v39  ;;  %v917_v37 = vmul.f32 %v914_v8, %v1923_v33 }
  0xcc   : > { %v1458_v23 = vclamps-f32 %v1953_v22, 1.0 }
  0xcd   : > { %v683_v24 = vpop.permute.xlu1 %682 }
  0xce   : > { %v1959_v29 = vand.u32 2147483647, %v1458_v23  ;;  %v689_v54 = vmul.f32 %v683_v24, %v1929_v40  ;;  %vm2030_vm6 = vcmp.ge.f32.partialorder %v1458_v23, 0.0 }
  0xd0   : > { %v514_v35 = vmul.f32 -0.0012624911, %v1959_v29  ;;  %v542_v36 = vsub.f32 1.0, %v1959_v29  ;;  %v701_v9 = vadd.f32 %v699_v63, %v689_v54 }
  0xd1   : > { %v687_v34 = vpop.permute.xlu1 %686 }
  0xd2   : > { %v516_v38 = vadd.f32 0.00667009, %v514_v35  ;;  %v1965_v42 = vmax.f32 %v542_v36, 0.0  ;;  %v690_v49 = vmul.f32 %v687_v34, %v1917_v27  ;;  %v1103_v34 = vpop.permute.xlu0 %1102 }
  0xd4   : > { %v518_v45 = vmul.f32 %v516_v38, %v1959_v29  ;;  %1627 = vrsqrt.f32 %v1965_v42  ;;  %vm554_vm5 = vcmp.eq.f32.partialorder %v1965_v42, inf  ;;  %v557_v63 = vand.u32 2147483648, %v1965_v42 }
  0xd5   : > { %v1622_v44 = vpop.eup %1621  ;;  %vm556_vm8 = vcmp.eq.f32.partialorder %v1965_v42, 0.0 }
  0xd6   : > { %v1969_v46 = vmul.f32 %v1622_v44, %v485_v43  ;;  %v697_v48 = vpop.permute.xlu1 %696  ;;  %v520_v52 = vadd.f32 -0.017088126, %v518_v45  ;;  %v1624_v7 = vpop.eup %1623 }
  0xd7   : > { %v700_v50 = vmul.f32 %v697_v48, %v1915_v26  ;;  %v1626_v15 = vpop.eup %1625 }
  0xd8   : > { %v1457_v53 = vclamps-f32 %v1969_v46, 1.0  ;;  %v522_v60 = vmul.f32 %v520_v52, %v1959_v29 }
  0xd9   : > { %v702_v58 = vadd.f32 %v700_v50, %v690_v49  ;;  %v2015_v49 = vmul.f32 %v1103_v34, %v1927_v39 }
  0xda   : > { %v1982_v0 = vand.u32 2147483647, %v1457_v53  ;;  %v524_v6 = vadd.f32 0.03089188, %v522_v60  ;;  %vm2073_vm11 = vcmp.ge.f32.partialorder %v1457_v53, 0.0 }
  0xdb   : > { %v714_v3 = vadd.f32 %v712_v55, %v702_v58  ;;  %v705_v5 = vpop.permute.xlu1 %704 }
  0xdc   : > { %v711_v10 = vmul.f32 %v705_v5, %v1935_v47  ;;  %v513_v11 = vmul.f32 -0.0012624911, %v1982_v0  ;;  %v541_v51 = vsub.f32 1.0, %v1982_v0  ;;  %v526_v62 = vmul.f32 %v524_v6, %v1959_v29 }
  0xdd   : > { %v1989_v12 = vmul.f32 %v1624_v7, %v714_v3 }
  0xde   : > { %v713_v57 = vadd.f32 %v711_v10, %v701_v9  ;;  %v515_v4 = vadd.f32 0.00667009, %v513_v11  ;;  %v1992_v14 = vmax.f32 %v541_v51, 0.0  ;;  %v528_v20 = vadd.f32 -0.050174303, %v526_v62  ;;  %v1119_v51 = vpop.permute.xlu0 %1118 }
  0xdf   : > { %v1465_v17 = vclamps-f32 %v1989_v12, 1.0 }
  0xe0   : > { %v1995_v24 = vmul.f32 %v1626_v15, %v713_v57  ;;  %v888_v25 = vpop.permute.xlu1 %887  ;;  %v517_v59 = vmul.f32 %v515_v4, %v1982_v0  ;;  %1629 = vrsqrt.f32 %v1992_v14  ;;  %v530_v30 = vmul.f32 %v528_v20, %v1959_v29 }
  0xe1   : > { %1631 = vrcp.f32 %v1136_v56  ;;  %v2001_v28 = vand.u32 2147483647, %v1465_v17  ;;  %v1628_v31 = vpop.eup %1627  ;;  %v894_v62 = vmul.f32 %v888_v25, %v1929_v40  ;;  %vm547_vm9 = vcmp.eq.f32.partialorder %v1992_v14, inf }
  0xe2   : > { %1633 = vrcp.f32 %v931_v13  ;;  %v1464_v35 = vclamps-f32 %v1995_v24, 1.0  ;;  %v519_v36 = vadd.f32 -0.017088126, %v517_v59  ;;  %v532_v38 = vadd.f32 0.08897899, %v530_v30 }
  0xe3   : > { %1635 = vrcp.f32 %v930_v16  ;;  %v738_v43 = vmul.f32 -0.0012624911, %v2001_v28  ;;  %v766_v41 = vsub.f32 1.0, %v2001_v28  ;;  %v553_v52 = vmul.f32 %v1628_v31, %v1965_v42 }
  0xe4   : > { %1637 = vrcp.f32 %v1135_v21  ;;  %v2010_v44 = vand.u32 2147483647, %v1464_v35  ;;  %v892_v45 = vpop.permute.xlu1 %891  ;;  %v521_v48 = vmul.f32 %v519_v36, %v1982_v0  ;;  %v534_v50 = vmul.f32 %v532_v38, %v1959_v29 }
  0xe5   : > { %v740_v54 = vadd.f32 0.00667009, %v738_v43  ;;  %v2024_v2 = vmax.f32 %v766_v41, 0.0  ;;  %v895_v39 = vmul.f32 %v892_v45, %v1917_v27  ;;  %v555_v10 = vsel %vm554_vm5, %v1965_v42, %v553_v52 }
  0xe6   : > { %v523_v55 = vadd.f32 0.03089188, %v521_v48  ;;  %v737_v58 = vmul.f32 -0.0012624911, %v2010_v44  ;;  %v765_v60 = vsub.f32 1.0, %v2010_v44  ;;  %v558_v15 = vsel %vm556_vm8, %v557_v63, %v555_v10 }
  0xe7   : > { %v536_v61 = vadd.f32 -0.2145988, %v534_v50  ;;  %v742_v1 = vmul.f32 %v740_v54, %v2001_v28  ;;  %1639 = vrsqrt.f32 %v2024_v2  ;;  %v2047_v21 = vmul.f32 %v1119_v51, %v1923_v33 }
  0xe8   : > { %v525_v3 = vmul.f32 %v523_v55, %v1982_v0  ;;  %v739_v6 = vadd.f32 0.00667009, %v737_v58  ;;  %v2034_v7 = vmax.f32 %v765_v60, 0.0  ;;  %vm549_vm10 = vcmp.eq.f32.partialorder %v1992_v14, 0.0 }
  0xe9   : > { %v902_v8 = vpop.permute.xlu1 %901  ;;  %v538_v9 = vmul.f32 %v536_v61, %v1959_v29  ;;  %v744_v11 = vadd.f32 -0.017088126, %v742_v1  ;;  %v906_v43 = vadd.f32 %v904_v32, %v894_v62  ;;  %v550_v60 = vand.u32 2147483648, %v1992_v14 }
  0xea   : > { %v905_v56 = vmul.f32 %v902_v8, %v1915_v26  ;;  %v527_v22 = vadd.f32 -0.050174303, %v525_v3  ;;  %v741_v23 = vmul.f32 %v739_v6, %v2010_v44  ;;  %1641 = vrsqrt.f32 %v2034_v7 }
  0xeb   : > { %v540_v13 = vadd.f32 1.5707963, %v538_v9  ;;  %v746_v29 = vmul.f32 %v744_v11, %v2001_v28  ;;  %vm771_vm12 = vcmp.eq.f32.partialorder %v2034_v7, inf  ;;  %vm778_vm13 = vcmp.eq.f32.partialorder %v2024_v2, inf }
  0xec   : > { %v907_v57 = vadd.f32 %v905_v56, %v895_v39  ;;  %v529_v4 = vmul.f32 %v527_v22, %v1982_v0  ;;  %v743_v16 = vadd.f32 -0.017088126, %v741_v23  ;;  %v774_v23 = vand.u32 2147483648, %v2034_v7 }
  0xed   : > { %v1630_v20 = vpop.eup %1629  ;;  %v560_v59 = vmul.f32 %v558_v15, %v540_v13  ;;  %v748_v30 = vadd.f32 0.03089188, %v746_v29  ;;  %vm780_vm14 = vcmp.eq.f32.partialorder %v2024_v2, 0.0  ;;  %v781_v29 = vand.u32 2147483648, %v2024_v2 }
  0xee   : > { %v2050_v31 = vpop.eup %1631  ;;  %v919_v25 = vadd.f32 %v917_v37, %v907_v57  ;;  %v910_v34 = vpop.permute.xlu1 %909  ;;  %v531_v42 = vadd.f32 0.08897899, %v529_v4  ;;  %v745_v36 = vmul.f32 %v743_v16, %v2010_v44  ;;  %v546_v37 = vmul.f32 %v1630_v20, %v1992_v14 }
  0xef   : > { %v1634_v38 = vpop.eup %1633  ;;  %v916_v45 = vmul.f32 %v910_v34, %v1935_v47  ;;  %v564_v48 = vsub.f32 3.1415927, %v560_v59  ;;  %v750_v33 = vmul.f32 %v748_v30, %v2001_v28  ;;  %vm773_vm15 = vcmp.eq.f32.partialorder %v2034_v7, 0.0 }
  0xf0   : > { %v1636_v41 = vpop.eup %1635  ;;  %v2056_v50 = vmul.f32 %v1634_v38, %v919_v25  ;;  %v533_v52 = vmul.f32 %v531_v42, %v1982_v0  ;;  %v747_v54 = vadd.f32 0.03089188, %v745_v36  ;;  %v548_v46 = vsel %vm547_vm9, %v1992_v14, %v546_v37 }
  0xf1   : > { %v2060_v55 = vpop.eup %1637  ;;  %v918_v58 = vadd.f32 %v916_v45, %v906_v43  ;;  %v2065_v32 = vsel %vm2030_vm6, %v560_v59, %v564_v48  ;;  %v752_v61 = vadd.f32 -0.050174303, %v750_v33  ;;  %v551_v15 = vsel %vm549_vm10, %v550_v60, %v548_v46 }
  0xf2   : > { %v1468_v63 = vclamps-f32 %v2056_v50, 1.0  ;;  %v535_v1 = vadd.f32 -0.2145988, %v533_v52  ;;  %v568_v39 = vmul.f32 %v2065_v32, %v2065_v32  ;;  %v749_v3 = vmul.f32 %v747_v54, %v2010_v44 }
  0xf3   : > { %v2077_v8 = vmul.f32 %v1636_v41, %v918_v58  ;;  %v1093_v5 = vpop.permute.xlu1 %1092  ;;  %v754_v9 = vmul.f32 %v752_v61, %v2001_v28  ;;  %vm786_vm1 = vcmp.ge.f32.partialorder %v1465_v17, 0.0  ;;  %vm785_vm2 = vcmp.ge.f32.partialorder %v1464_v35, 0.0 }
  0xf4   : > { %v2084_v10 = vand.u32 2147483647, %v1468_v63  ;;  %v537_v11 = vmul.f32 %v535_v1, %v1982_v0  ;;  %v573_v53 = vsel %vm569_vm7, %v568_v39, 0.0  ;;  %v751_v56 = vadd.f32 -0.050174303, %v749_v3  ;;  %v1640_v62 = vpop.eup %1639 }
  0xf5   : > { %v1467_v51 = vclamps-f32 %v2077_v8, 1.0  ;;  %574 = vadd.xlane.f32.xlu0 %v573_v53  ;;  %v756_v22 = vadd.f32 0.08897899, %v754_v9  ;;  %v777_v34 = vmul.f32 %v1640_v62, %v2024_v2  ;;  %v1099_v36 = vmul.f32 %v1093_v5, %v1929_v40 }
  0xf6   : > { %v539_v13 = vadd.f32 1.5707963, %v537_v11  ;;  %v943_v0 = vmul.f32 -0.0012624911, %v2084_v10  ;;  %v753_v20 = vmul.f32 %v751_v56, %v2010_v44  ;;  %v971_v42 = vsub.f32 1.0, %v2084_v10 }
  0xf7   : > { %v1642_v57 = vpop.eup %1641  ;;  %v2098_v4 = vand.u32 2147483647, %v1467_v51  ;;  %v1097_v16 = vpop.permute.xlu1 %1096  ;;  %v758_v59 = vmul.f32 %v756_v22, %v2001_v28  ;;  %v779_v33 = vsel %vm778_vm13, %v2024_v2, %v777_v34  ;;  %vm991_vm6 = vcmp.ge.f32.partialorder %v1468_v63, 0.0 }
  0xf8   : > { %v559_v30 = vmul.f32 %v551_v15, %v539_v13  ;;  %v770_v25 = vmul.f32 %v1642_v57, %v2034_v7  ;;  %v755_v38 = vadd.f32 0.08897899, %v753_v20  ;;  %v1100_v48 = vmul.f32 %v1097_v16, %v1917_v27 }
  0xf9   : > { %v760_v43 = vadd.f32 -0.2145988, %v758_v59  ;;  %v942_v14 = vmul.f32 -0.0012624911, %v2098_v4  ;;  %v945_v41 = vadd.f32 0.00667009, %v943_v0  ;;  %v782_v54 = vsel %vm780_vm14, %v781_v29, %v779_v33 }
  0xfa   : > { %v563_v45 = vsub.f32 3.1415927, %v559_v30  ;;  %v757_v52 = vmul.f32 %v755_v38, %v2010_v44  ;;  %v772_v40 = vsel %vm771_vm12, %v2034_v7, %v770_v25  ;;  %v970_v1 = vsub.f32 1.0, %v2098_v4 }
  0xfb   : > { %v762_v37 = vmul.f32 %v760_v43, %v2001_v28  ;;  %v944_v60 = vadd.f32 0.00667009, %v942_v14  ;;  %v947_v61 = vmul.f32 %v945_v41, %v2084_v10  ;;  %v2133_v22 = vmax.f32 %v971_v42, 0.0 }
  0xfc   : > { %v565_v58 = vsel %vm2073_vm11, %v559_v30, %v563_v45  ;;  %v1107_v27 = vpop.permute.xlu1 %1106  ;;  %v759_v5 = vadd.f32 -0.2145988, %v757_v52  ;;  %v2128_v46 = vmax.f32 %v970_v1, 0.0  ;;  %v1111_v13 = vadd.f32 %v2015_v49, %v1099_v36 }
  0xfd   : > { %v580_v39 = vpack.c.bf16 %v2065_v32, %v565_v58  ;;  %v1110_v28 = vmul.f32 %v1107_v27, %v1915_v26  ;;  %v567_v3 = vmul.f32 %v565_v58, %v565_v58  ;;  %v764_v9 = vadd.f32 1.5707963, %v762_v37 }
  0xfe   : > { %v946_v11 = vmul.f32 %v944_v60, %v2098_v4  ;;  %v949_v2 = vadd.f32 -0.017088126, %v947_v61  ;;  %v761_v56 = vmul.f32 %v759_v5, %v2010_v44  ;;  %1643 = vrsqrt.f32 %v2128_v46 }
  0xff   : > { %v1112_v6 = vadd.f32 %v1110_v28, %v1100_v48  ;;  %1493 = vmatmul.mubr.msk.bf16.vlgmr.msra.gmra.mxu0 %vm569_vm7, %v580_v39  ;;  %v570_v53 = vsel %vm569_vm7, %v567_v3, 0.0  ;;  %v784_v32 = vmul.f32 %v782_v54, %v764_v9  ;;  %v775_v44 = vsel %vm773_vm15, %v774_v23, %v772_v40 }
 0x100   : > { %571 = vadd.xlane.f32.xlu1 %v570_v53  ;;  %1503 = vmatpush3.bf16.msra.mxu0 %v1898_v18  ;;  %v948_v26 = vadd.f32 -0.017088126, %v946_v11  ;;  %v951_v62 = vmul.f32 %v949_v2, %v2084_v10  ;;  %v763_v57 = vadd.f32 1.5707963, %v761_v56  ;;  %1645 = vrsqrt.f32 %v2133_v22 }
 0x101   : > { %v1124_v29 = vadd.f32 %v2047_v21, %v1112_v6  ;;  %v1115_v0 = vpop.permute.xlu1 %1114  ;;  %1504 = vmatprep.mubr.msk.bf16.mxu0 %vm1774_vm0, %v1773_v19  ;;  %v788_v16 = vsub.f32 3.1415927, %v784_v32  ;;  %vm976_vm3 = vcmp.eq.f32.partialorder %v2128_v46, inf  ;;  %v979_v53 = vand.u32 2147483648, %v2128_v46 }
 0x102   : > { %v1121_v15 = vmul.f32 %v1115_v0, %v1935_v47  ;;  %v950_v20 = vmul.f32 %v948_v26, %v2098_v4  ;;  %v953_v59 = vadd.f32 0.03089188, %v951_v62  ;;  %v783_v49 = vmul.f32 %v775_v44, %v763_v57 }
 0x103   : > { %v2147_v30 = vmul.f32 %v2050_v31, %v1124_v29  ;;  %v790_v21 = vsel %vm786_vm1, %v784_v32, %v788_v16  ;;  %v986_v0 = vand.u32 2147483648, %v2133_v22  ;;  %vm985_vm4 = vcmp.eq.f32.partialorder %v2133_v22, 0.0 }
 0x104   : > { %v1123_v7 = vadd.f32 %v1121_v15, %v1111_v13  ;;  %v952_v23 = vadd.f32 0.03089188, %v950_v20  ;;  %v955_v25 = vmul.f32 %v953_v59, %v2084_v10  ;;  %v787_v34 = vsub.f32 3.1415927, %v783_v49 }
 0x105   : > { %v1471_v47 = vclamps-f32 %v2147_v30, 1.0  ;;  %v792_v42 = vmul.f32 %v790_v21, %v790_v21  ;;  %vm978_vm5 = vcmp.eq.f32.partialorder %v2128_v46, 0.0  ;;  %vm990_vm8 = vcmp.ge.f32.partialorder %v1467_v51, 0.0 }
 0x106   : > { %v2157_v31 = vmul.f32 %v2060_v55, %v1123_v7  ;;  %v954_v12 = vmul.f32 %v952_v23, %v2098_v4  ;;  %v957_v17 = vadd.f32 -0.050174303, %v955_v25  ;;  %v789_v38 = vsel %vm785_vm2, %v783_v49, %v787_v34 }
 0x107   : > { %v2162_v36 = vand.u32 2147483647, %v1471_v47  ;;  %v796_v43 = vsel %vm569_vm7, %v792_v42, 0.0  ;;  %v803_v45 = vpack.c.bf16 %v790_v21, %v789_v38  ;;  %v791_v48 = vmul.f32 %v789_v38, %v789_v38 }
 0x108   : > { %v1470_v14 = vclamps-f32 %v2157_v31, 1.0  ;;  %797 = vadd.xlane.f32.xlu0 %v796_v43  ;;  %v956_v24 = vadd.f32 -0.050174303, %v954_v12  ;;  %v959_v35 = vmul.f32 %v957_v17, %v2084_v10  ;;  %vm1196_vm13 = vcmp.ge.f32.partialorder %v1471_v47, 0.0 }
 0x109   : > { %v1148_v55 = vmul.f32 -0.0012624911, %v2162_v36  ;;  %v1176_v33 = vsub.f32 1.0, %v2162_v36  ;;  %1499 = vmatmul.mubr.msk.bf16.vlgmr.msra.gmra.mxu1 %vm569_vm7, %v803_v45  ;;  %v793_v52 = vsel %vm569_vm7, %v791_v48, 0.0 }
 0x10a   : > { %v2171_v41 = vand.u32 2147483647, %v1470_v14  ;;  %v958_v37 = vmul.f32 %v956_v24, %v2098_v4  ;;  %794 = vadd.xlane.f32.xlu1 %v793_v52  ;;  %v961_v40 = vadd.f32 0.08897899, %v959_v35  ;;  %1509 = vmatpush3.bf16.msra.mxu1 %v1898_v18  ;;  %vm1195_vm14 = vcmp.ge.f32.partialorder %v1470_v14, 0.0 }
 0x10b   : > { %v1150_v54 = vadd.f32 0.00667009, %v1148_v55  ;;  %v2177_v58 = vmax.f32 %v1176_v33, 0.0  ;;  %1510 = vmatprep.mubr.msk.bf16.mxu1 %vm1774_vm0, %v1773_v19  ;;  %v1644_v1 = vpop.eup %1643  ;;  %vm983_vm0 = vcmp.eq.f32.partialorder %v2133_v22, inf }
 0x10c   : > { %v960_v27 = vadd.f32 0.08897899, %v958_v37  ;;  %v1147_v60 = vmul.f32 -0.0012624911, %v2171_v41  ;;  %v1175_v61 = vsub.f32 1.0, %v2171_v41  ;;  %v963_v39 = vmul.f32 %v961_v40, %v2084_v10 }
 0x10d   : > { %v1152_v28 = vmul.f32 %v1150_v54, %v2162_v36  ;;  %1647 = vrsqrt.f32 %v2177_v58  ;;  %v975_v3 = vmul.f32 %v1644_v1, %v2128_v46  ;;  %v1646_v6 = vpop.eup %1645  ;;  %vm1188_vm9 = vcmp.eq.f32.partialorder %v2177_v58, inf }
 0x10e   : > { %v962_v18 = vmul.f32 %v960_v27, %v2098_v4  ;;  %v1149_v5 = vadd.f32 0.00667009, %v1147_v60  ;;  %v2188_v9 = vmax.f32 %v1175_v61, 0.0  ;;  %v965_v11 = vadd.f32 -0.2145988, %v963_v39 }
 0x10f   : > { %v1154_v2 = vadd.f32 -0.017088126, %v1152_v28  ;;  %v982_v26 = vmul.f32 %v1646_v6, %v2133_v22  ;;  %v977_v29 = vsel %vm976_vm3, %v2128_v46, %v975_v3  ;;  %v1191_v1 = vand.u32 2147483648, %v2177_v58 }
 0x110   : > { %v964_v19 = vadd.f32 -0.2145988, %v962_v18  ;;  %v1151_v56 = vmul.f32 %v1149_v5, %v2171_v41  ;;  %1649 = vrsqrt.f32 %v2188_v9  ;;  %v967_v32 = vmul.f32 %v965_v11, %v2084_v10 }
 0x111   : > { %v1156_v62 = vmul.f32 %v1154_v2, %v2162_v36  ;;  %v984_v15 = vsel %vm983_vm0, %v2133_v22, %v982_v26  ;;  %v980_v49 = vsel %vm978_vm5, %v979_v53, %v977_v29  ;;  %vm1181_vm10 = vcmp.eq.f32.partialorder %v2188_v9, inf }
 0x112   : > { %v966_v13 = vmul.f32 %v964_v19, %v2098_v4  ;;  %v1153_v57 = vadd.f32 -0.017088126, %v1151_v56  ;;  %v969_v44 = vadd.f32 1.5707963, %v967_v32  ;;  %v987_v20 = vsel %vm985_vm4, %v986_v0, %v984_v15 }
 0x113   : > { %v1158_v16 = vadd.f32 0.03089188, %v1156_v62  ;;  %vm1190_vm11 = vcmp.eq.f32.partialorder %v2177_v58, 0.0  ;;  %v1184_v5 = vand.u32 2147483648, %v2188_v9  ;;  %vm1183_vm12 = vcmp.eq.f32.partialorder %v2188_v9, 0.0 }
 0x114   : > { %v968_v10 = vadd.f32 1.5707963, %v966_v13  ;;  %v1155_v59 = vmul.f32 %v1153_v57, %v2171_v41  ;;  %v989_v7 = vmul.f32 %v987_v20, %v969_v44 }
 0x115   : > { %v1160_v4 = vmul.f32 %v1158_v16, %v2162_v36  ;;  %v2240_v16 = vld [vmem:[%s2376_s5] ss:$0 sm:$0xff] }
 0x116   : > { %v988_v21 = vmul.f32 %v980_v49, %v968_v10  ;;  %v1157_v23 = vadd.f32 0.03089188, %v1155_v59  ;;  %v993_v25 = vsub.f32 3.1415927, %v989_v7 }
 0x117   : > { %v1162_v34 = vadd.f32 -0.050174303, %v1160_v4 }
 0x118   : > { %v992_v42 = vsub.f32 3.1415927, %v988_v21  ;;  %v1159_v22 = vmul.f32 %v1157_v23, %v2171_v41  ;;  %v995_v46 = vsel %vm991_vm6, %v989_v7, %v993_v25 }
 0x119   : > { %v1164_v12 = vmul.f32 %v1162_v34, %v2162_v36  ;;  %v997_v43 = vmul.f32 %v995_v46, %v995_v46 }
 0x11a   : > { %v1648_v17 = vpop.eup %1647  ;;  %v994_v38 = vsel %vm990_vm8, %v988_v21, %v992_v42  ;;  %v1161_v45 = vadd.f32 -0.050174303, %v1159_v22 }
 0x11b   : > { %v1008_v48 = vpack.c.bf16 %v995_v46, %v994_v38  ;;  %v996_v24 = vmul.f32 %v994_v38, %v994_v38  ;;  %v1166_v35 = vadd.f32 0.08897899, %v1164_v12  ;;  %v1001_v55 = vsel %vm569_vm7, %v997_v43, 0.0 }
 0x11c   : > { %v1163_v50 = vmul.f32 %v1161_v45, %v2171_v41  ;;  %1002 = vadd.xlane.f32.xlu0 %v1001_v55  ;;  %v1187_v33 = vmul.f32 %v1648_v17, %v2177_v58 }
 0x11d   : > { %v1650_v63 = vpop.eup %1649  ;;  %1505 = vmatmul.mubr.msk.bf16.vlgmr.msra.gmra.mxu0 %vm569_vm7, %v1008_v48  ;;  %v998_v8 = vsel %vm569_vm7, %v996_v24, 0.0  ;;  %v1168_v51 = vmul.f32 %v1166_v35, %v2162_v36 }
 0x11e   : > { %999 = vadd.xlane.f32.xlu1 %v998_v8  ;;  %v1165_v52 = vadd.f32 0.08897899, %v1163_v50  ;;  %v1180_v54 = vmul.f32 %v1650_v63, %v2188_v9  ;;  %v1189_v60 = vsel %vm1188_vm9, %v2177_v58, %v1187_v33 }
 0x11f   : > { %v1170_v37 = vadd.f32 -0.2145988, %v1168_v51  ;;  %v1192_v3 = vsel %vm1190_vm11, %v1191_v1, %v1189_v60 }
 0x120   : > { %v1167_v40 = vmul.f32 %v1165_v52, %v2171_v41  ;;  %v1182_v18 = vsel %vm1181_vm10, %v2188_v9, %v1180_v54 }
 0x121   : > { %v1172_v27 = vmul.f32 %v1170_v37, %v2162_v36  ;;  %v1185_v36 = vsel %vm1183_vm12, %v1184_v5, %v1182_v18 }
 0x122   : > { %v1169_v61 = vadd.f32 -0.2145988, %v1167_v40 }
 0x123   : > { %v1174_v39 = vadd.f32 1.5707963, %v1172_v27 }
 0x124   : > { %v1171_v28 = vmul.f32 %v1169_v61, %v2171_v41 }
 0x125   : > { %v1194_v11 = vmul.f32 %v1192_v3, %v1174_v39 }
 0x126   : > { %v1173_v2 = vadd.f32 1.5707963, %v1171_v28 }
 0x127   : > { %v1198_v6 = vsub.f32 3.1415927, %v1194_v11 }
 0x128   : > { %v1193_v19 = vmul.f32 %v1185_v36, %v1173_v2 }
 0x129   : > { %v1200_v53 = vsel %vm1196_vm13, %v1194_v11, %v1198_v6 }
 0x12a   : > { %v1197_v56 = vsub.f32 3.1415927, %v1193_v19  ;;  %v1202_v58 = vmul.f32 %v1200_v53, %v1200_v53 }
 0x12c   : > { %v1199_v41 = vsel %vm1195_vm14, %v1193_v19, %v1197_v56  ;;  %v1206_v32 = vsel %vm569_vm7, %v1202_v58, 0.0 }
 0x12d   : > { %v1213_v26 = vpack.c.bf16 %v1200_v53, %v1199_v41  ;;  %1207 = vadd.xlane.f32.xlu0 %v1206_v32  ;;  %v1201_v62 = vmul.f32 %v1199_v41, %v1199_v41 }
 0x12f   : > { %1511 = vmatmul.mubr.msk.bf16.vlgmr.msra.gmra.mxu1 %vm569_vm7, %v1213_v26  ;;  %v1203_v9 = vsel %vm569_vm7, %v1201_v62, 0.0  ;;  %vm639_vm7 = vcmask 261120  }
 0x130   : > { %1204 = vadd.xlane.f32.xlu1 %v1203_v9 }
 0x17e   : > { %v575_v47 = vpop.xlane.xlu0 %574 }
 0x17f   : > { %v577_v29 = vmax.f32 %v575_v47, 1e-24 }
 0x189   : > { %v572_v13 = vpop.xlane.xlu1 %571 }
 0x18a   : > { %v576_v30 = vmax.f32 %v572_v13, 1e-24 }
 0x18c   : > { %1651 = vrsqrt.f32 %v576_v30 }
 0x18d   : > { %1653 = vrsqrt.f32 %v577_v29 }
 0x191   : > { %v798_v14 = vpop.xlane.xlu0 %797 }
 0x192   : > { %v800_v57 = vmax.f32 %v798_v14, 1e-24 }
 0x193   : > { %v795_v0 = vpop.xlane.xlu1 %794 }
 0x194   : > { %v799_v31 = vmax.f32 %v795_v0, 1e-24 }
 0x196   : > { %1655 = vrsqrt.f32 %v799_v31 }
 0x197   : > { %1657 = vrsqrt.f32 %v800_v57 }
 0x199   : > { %v1652_v44 = vpop.eup %1651 }
 0x19a   : > { %v1654_v49 = vpop.eup %1653 }
 0x1a3   : > { %v1656_v22 = vpop.eup %1655 }
 0x1a4   : > { %v1658_v48 = vpop.eup %1657 }
 0x1a5   : > { %v1003_v43 = vpop.xlane.xlu0 %1002 }
 0x1a6   : > { %v1005_v50 = vmax.f32 %v1003_v43, 1e-24 }
 0x1a7   : > { %v1000_v42 = vpop.xlane.xlu1 %999 }
 0x1a8   : > { %v1004_v17 = vmax.f32 %v1000_v42, 1e-24 }
 0x1aa   : > { %1659 = vrsqrt.f32 %v1004_v17 }
 0x1ab   : > { %1661 = vrsqrt.f32 %v1005_v50 }
 0x1b6   : > { %v1208_v27 = vpop.xlane.xlu0 %1207 }
 0x1b7   : > { %v1660_v52 = vpop.eup %1659  ;;  %v1210_v28 = vmax.f32 %v1208_v27, 1e-24 }
 0x1b8   : > { %v1662_v1 = vpop.eup %1661 }
 0x1b9   : > { %v1205_v33 = vpop.xlane.xlu1 %1204 }
 0x1ba   : > { %v1209_v40 = vmax.f32 %v1205_v33, 1e-24 }
 0x1bc   : > { %1663 = vrsqrt.f32 %v1209_v40 }
 0x1bd   : > { %1665 = vrsqrt.f32 %v1210_v28 }
 0x1bf   : > { %v624_v15 = vpop.f32.mrf.mxu0 }
 0x1c0   : > { %v631_v10 = vmul.f32 %v1652_v44, %v624_v15 }
 0x1c1   : > { %v1494_v20 = vpop.f32.mrf.mxu0 }
 0x1c2   : > { %v2243_v59 = vadd.f32 %v2240_v16, %v631_v10 }
 0x1c3   : > { %v627_v7 = vpop.f32.mrf.mxu0 }
 0x1c4   : > { %v632_v4 = vmul.f32 %v1654_v49, %v627_v7  ;;  %v640_v21 = vsel %vm639_vm7, %v2243_v59, 0.0 }
 0x1c5   : > { %v1495_v23 = vpop.f32.mrf.mxu0  ;;  %641 = vadd.xlane.f32.xlu1 %v640_v21 }
 0x1c6   : > { %v2248_v25 = vadd.f32 %v2240_v16, %v632_v4 }
 0x1c8   : > { %v643_v34 = vsel %vm639_vm7, %v2248_v25, 0.0 }
 0x1c9   : > { %644 = vadd.xlane.f32.xlu0 %v643_v34  ;;  %v841_v46 = vpop.f32.mrf.mxu1  ;;  %v1664_v36 = vpop.eup %1663 }
 0x1ca   : > { %v848_v12 = vmul.f32 %v1656_v22, %v841_v46  ;;  %v1666_v58 = vpop.eup %1665 }
 0x1cb   : > { %v1500_v38 = vpop.f32.mrf.mxu1 }
 0x1cc   : > { %v850_v45 = vadd.f32 %v2240_v16, %v848_v12 }
 0x1cd   : > { %v844_v24 = vpop.f32.mrf.mxu1 }
 0x1ce   : > { %v849_v35 = vmul.f32 %v1658_v48, %v844_v24  ;;  %v852_v55 = vsel %vm639_vm7, %v850_v45, 0.0 }
 0x1cf   : > { %v1501_v63 = vpop.f32.mrf.mxu1  ;;  %853 = vadd.xlane.f32.xlu1 %v852_v55 }
 0x1d0   : > { %v851_v8 = vadd.f32 %v2240_v16, %v849_v35 }
 0x1d2   : > { %v855_v51 = vsel %vm639_vm7, %v851_v8, 0.0 }
 0x1d3   : > { %856 = vadd.xlane.f32.xlu0 %v855_v51 }
 0x1dd   : > { %v1046_v37 = vpop.f32.mrf.mxu0 }
 0x1de   : > { %v1053_v54 = vmul.f32 %v1660_v52, %v1046_v37 }
 0x1df   : > { %v1506_v60 = vpop.f32.mrf.mxu0 }
 0x1e0   : > { %v1055_v61 = vadd.f32 %v2240_v16, %v1053_v54 }
 0x1e1   : > { %v1049_v39 = vpop.f32.mrf.mxu0 }
 0x1e2   : > { %v1054_v18 = vmul.f32 %v1662_v1, %v1049_v39  ;;  %v1057_v3 = vsel %vm639_vm7, %v1055_v61, 0.0 }
 0x1e3   : > { %v1507_v5 = vpop.f32.mrf.mxu0  ;;  %1058 = vadd.xlane.f32.xlu1 %v1057_v3 }
 0x1e4   : > { %v1056_v11 = vadd.f32 %v2240_v16, %v1054_v18 }
 0x1e6   : > { %v1060_v2 = vsel %vm639_vm7, %v1056_v11, 0.0 }
 0x1e7   : > { %1061 = vadd.xlane.f32.xlu0 %v1060_v2 }
 0x1ef   : > { %v1251_v6 = vpop.f32.mrf.mxu1 }
 0x1f0   : > { %v1258_v19 = vmul.f32 %v1664_v36, %v1251_v6 }
 0x1f1   : > { %v1512_v53 = vpop.f32.mrf.mxu1 }
 0x1f2   : > { %v1260_v56 = vadd.f32 %v2240_v16, %v1258_v19 }
 0x1f3   : > { %v1254_v41 = vpop.f32.mrf.mxu1 }
 0x1f4   : > { %v1259_v32 = vmul.f32 %v1666_v58, %v1254_v41  ;;  %v1262_v26 = vsel %vm639_vm7, %v1260_v56, 0.0 }
 0x1f5   : > { %1263 = vadd.xlane.f32.xlu1 %v1262_v26  ;;  %v1513_v62 = vpop.f32.mrf.mxu1 }
 0x1f6   : > { %v1261_v9 = vadd.f32 %v2240_v16, %v1259_v32 }
 0x1f8   : > { %v1265_v13 = vsel %vm639_vm7, %v1261_v9, 0.0 }
 0x1f9   : > { %1266 = vadd.xlane.f32.xlu0 %v1265_v13 }
 0x24e   : > { %v642_v30 = vpop.xlane.xlu1 %641 }
 0x24f   : > { %v647_v47 = vmul.f32 0.03125, %v642_v30 }
 0x251   : > { %v2265_v29 = vsub.f32 %v2243_v59, %v647_v47 }
 0x252   : > { %v645_v0 = vpop.xlane.xlu0 %644 }
 0x253   : > { %v648_v31 = vmul.f32 0.03125, %v645_v0  ;;  %v651_v14 = vmul.f32 %v2265_v29, %v2265_v29 }
 0x255   : > { %v2270_v57 = vsub.f32 %v2248_v25, %v648_v31  ;;  %v653_v44 = vsel %vm639_vm7, %v651_v14, 0.0 }
 0x256   : > { %654 = vadd.xlane.f32.xlu1 %v653_v44 }
 0x257   : > { %v652_v15 = vmul.f32 %v2270_v57, %v2270_v57 }
 0x258   : > { %v854_v16 = vpop.xlane.xlu1 %853 }
 0x259   : > { %v656_v10 = vsel %vm639_vm7, %v652_v15, 0.0  ;;  %v858_v20 = vmul.f32 0.03125, %v854_v16 }
 0x25a   : > { %657 = vadd.xlane.f32.xlu0 %v656_v10 }
 0x25b   : > { %v2276_v59 = vsub.f32 %v850_v45, %v858_v20  ;;  %v1462_v20 = vld [vmem:[%s2376_s5 + $0x1] ss:$0 sm:$0xff] }
 0x25c   : > { %v857_v49 = vpop.xlane.xlu0 %856 }
 0x25d   : > { %v859_v7 = vmul.f32 0.03125, %v857_v49  ;;  %v862_v4 = vmul.f32 %v2276_v59, %v2276_v59 }
 0x25f   : > { %v2280_v21 = vsub.f32 %v851_v8, %v859_v7  ;;  %v864_v23 = vsel %vm639_vm7, %v862_v4, 0.0 }
 0x260   : > { %865 = vadd.xlane.f32.xlu1 %v864_v23 }
 0x261   : > { %v863_v25 = vmul.f32 %v2280_v21, %v2280_v21 }
 0x263   : > { %v867_v34 = vsel %vm639_vm7, %v863_v25, 0.0 }
 0x264   : > { %868 = vadd.xlane.f32.xlu0 %v867_v34 }
 0x26c   : > { %v1059_v42 = vpop.xlane.xlu1 %1058 }
 0x26d   : > { %v1063_v22 = vmul.f32 0.03125, %v1059_v42 }
 0x26f   : > { %v1065_v46 = vsub.f32 %v1055_v61, %v1063_v22 }
 0x270   : > { %v1062_v12 = vpop.xlane.xlu0 %1061 }
 0x271   : > { %v1064_v17 = vmul.f32 0.03125, %v1062_v12  ;;  %v1067_v38 = vmul.f32 %v1065_v46, %v1065_v46 }
 0x273   : > { %v2286_v43 = vsub.f32 %v1056_v11, %v1064_v17  ;;  %v1069_v45 = vsel %vm639_vm7, %v1067_v38, 0.0 }
 0x274   : > { %1070 = vadd.xlane.f32.xlu1 %v1069_v45 }
 0x275   : > { %v1068_v48 = vmul.f32 %v2286_v43, %v2286_v43 }
 0x277   : > { %v1072_v24 = vsel %vm639_vm7, %v1068_v48, 0.0 }
 0x278   : > { %1073 = vadd.xlane.f32.xlu0 %v1072_v24 }
 0x27e   : > { %v1264_v35 = vpop.xlane.xlu1 %1263 }
 0x27f   : > { %v1268_v55 = vmul.f32 0.03125, %v1264_v35 }
 0x281   : > { %v2292_v50 = vsub.f32 %v1260_v56, %v1268_v55 }
 0x282   : > { %v1267_v63 = vpop.xlane.xlu0 %1266 }
 0x283   : > { %v1269_v8 = vmul.f32 0.03125, %v1267_v63  ;;  %v1272_v51 = vmul.f32 %v2292_v50, %v2292_v50 }
 0x285   : > { %v2296_v33 = vsub.f32 %v1261_v9, %v1269_v8  ;;  %v1274_v52 = vsel %vm639_vm7, %v1272_v51, 0.0 }
 0x286   : > { %1275 = vadd.xlane.f32.xlu1 %v1274_v52 }
 0x287   : > { %v1273_v37 = vmul.f32 %v2296_v33, %v2296_v33 }
 0x289   : > { %v1277_v40 = vsel %vm639_vm7, %v1273_v37, 0.0 }
 0x28a   : > { %1278 = vadd.xlane.f32.xlu0 %v1277_v40 }
 0x2df   : > { %v655_v54 = vpop.xlane.xlu1 %654 }
 0x2e0   : > { %v659_v28 = vmul.f32 0.03125, %v655_v54 }
 0x2e2   : > { %v661_v2 = vadd.f32 1e-05, %v659_v28 }
 0x2e3   : > { %v658_v27 = vpop.xlane.xlu0 %657 }
 0x2e4   : > { %v660_v36 = vmul.f32 0.03125, %v658_v27 }
 0x2e6   : > { %v662_v56 = vadd.f32 1e-05, %v660_v36 }
 0x2e9   : > { %v866_v60 = vpop.xlane.xlu1 %865 }
 0x2ea   : > { %v870_v39 = vmul.f32 0.03125, %v866_v60 }
 0x2ec   : > { %v872_v5 = vadd.f32 1e-05, %v870_v39 }
 0x2ed   : > { %v869_v61 = vpop.xlane.xlu0 %868 }
 0x2ee   : > { %v871_v11 = vmul.f32 0.03125, %v869_v61  ;;  %1667 = vrsqrt.f32 %v872_v5 }
 0x2ef   : > { %1669 = vrsqrt.f32 %v661_v2 }
 0x2f0   : > { %v873_v53 = vadd.f32 1e-05, %v871_v11 }
 0x2fb   : > { %v1668_v62 = vpop.eup %1667 }
 0x2fc   : > { %v1670_v13 = vpop.eup %1669  ;;  %v876_v0 = vmul.f32 %v1668_v62, %v2276_v59 }
 0x2fd   : > { %v1071_v1 = vpop.xlane.xlu1 %1070  ;;  %v665_v15 = vmul.f32 %v1670_v13, %v2265_v29  ;;  %v1463_v29 = vld [vmem:[%s2376_s5 + $0x2] ss:$0 sm:$0xff] }
 0x2fe   : > { %v1075_v18 = vmul.f32 0.03125, %v1071_v1  ;;  %v878_v49 = vmul.f32 %v1462_v20, %v876_v0 }
 0x2ff   : > { %v671_v23 = vmul.f32 %v1462_v20, %v665_v15 }
 0x300   : > { %v1077_v6 = vadd.f32 1e-05, %v1075_v18  ;;  %v880_v34 = vadd.f32 %v1463_v29, %v878_v49 }
 0x301   : > { %v1074_v3 = vpop.xlane.xlu0 %1073 }
 0x302   : > { %v1076_v19 = vmul.f32 0.03125, %v1074_v3  ;;  %1671 = vrsqrt.f32 %v1077_v6  ;;  %v882_v45 = vmax.f32 %v880_v34, 0.0 }
 0x303   : > { %1673 = vrsqrt.f32 %v873_v53 }
 0x304   : > { %v1078_v58 = vadd.f32 1e-05, %v1076_v19  ;;  %1675 = vrsqrt.f32 %v662_v56 }
 0x306   : > { %1677 = vrsqrt.f32 %v1078_v58 }
 0x30f   : > { %v1276_v41 = vpop.xlane.xlu1 %1275  ;;  %v1672_v47 = vpop.eup %1671 }
 0x310   : > { %v1280_v32 = vmul.f32 0.03125, %v1276_v41  ;;  %v1674_v14 = vpop.eup %1673  ;;  %v1081_v16 = vmul.f32 %v1672_v47, %v1065_v46  ;;  %v677_v46 = vadd.f32 %v1463_v29, %v671_v23 }
 0x311   : > { %v1676_v44 = vpop.eup %1675  ;;  %v877_v7 = vmul.f32 %v1674_v14, %v2280_v21 }
 0x312   : > { %v1282_v26 = vadd.f32 1e-05, %v1280_v32  ;;  %v666_v4 = vmul.f32 %v1676_v44, %v2270_v57  ;;  %v1083_v59 = vmul.f32 %v1462_v20, %v1081_v16  ;;  %v679_v24 = vmax.f32 %v677_v46, 0.0 }
 0x313   : > { %v1279_v9 = vpop.xlane.xlu0 %1278  ;;  %v1678_v10 = vpop.eup %1677  ;;  %v879_v42 = vmul.f32 %v1462_v20, %v877_v7 }
 0x314   : > { %1679 = vrsqrt.f32 %v1282_v26  ;;  %v1281_v30 = vmul.f32 0.03125, %v1279_v9  ;;  %v1082_v25 = vmul.f32 %v1678_v10, %v2286_v43  ;;  %v672_v22 = vmul.f32 %v1462_v20, %v666_v4 }
 0x315   : > { %v1085_v12 = vadd.f32 %v1463_v29, %v1083_v59  ;;  %v881_v21 = vadd.f32 %v1463_v29, %v879_v42  ;;  %v884_v52 = vmax.f32 %v679_v24, %v882_v45 }
 0x316   : > { %v1283_v31 = vadd.f32 1e-05, %v1281_v30  ;;  %v1084_v17 = vmul.f32 %v1462_v20, %v1082_v25  ;;  %v678_v48 = vadd.f32 %v1463_v29, %v672_v22 }
 0x317   : > { %v1087_v35 = vmax.f32 %v1085_v12, 0.0  ;;  %v883_v8 = vmax.f32 %v881_v21, 0.0 }
 0x318   : > { %1681 = vrsqrt.f32 %v1283_v31  ;;  %v1086_v43 = vadd.f32 %v1463_v29, %v1084_v17  ;;  %v680_v40 = vmax.f32 %v678_v48, 0.0 }
 0x319   : > { %v1089_v60 = vmax.f32 %v884_v52, %v1087_v35 }
 0x31a   : > { %v1088_v54 = vmax.f32 %v1086_v43, 0.0 }
 0x321   : > { %v1680_v38 = vpop.eup %1679 }
 0x322   : > { %v1286_v57 = vmul.f32 %v1680_v38, %v2292_v50  ;;  %v885_v50 = vmax.f32 %v680_v40, %v883_v8 }
 0x324   : > { %v1288_v55 = vmul.f32 %v1462_v20, %v1286_v57  ;;  %v1090_v28 = vmax.f32 %v885_v50, %v1088_v54 }
 0x325   : > { %v1682_v63 = vpop.eup %1681 }
 0x326   : > { %v1287_v51 = vmul.f32 %v1682_v63, %v2296_v33  ;;  %v1290_v37 = vadd.f32 %v1463_v29, %v1288_v55 }
 0x328   : > { %v1289_v27 = vmul.f32 %v1462_v20, %v1287_v51  ;;  %v1292_v61 = vmax.f32 %v1290_v37, 0.0 }
 0x32a   : > { %v1291_v1 = vadd.f32 %v1463_v29, %v1289_v27  ;;  %v1294_v39 = vmax.f32 %v1089_v60, %v1292_v61 }
 0x32c   : > { %v1293_v18 = vmax.f32 %v1291_v1, 0.0  ;;  %1296 = vst.msk [vmem:[%s334_s30] sm:$0xff] %vm639_vm7, %v1294_v39 }
 0x32e   : > { %v1295_v33 = vmax.f32 %v1090_v28, %v1293_v18 }
 0x330   : > { %1297 = vst.msk [vmem:[%s334_s30 + $0x8] sm:$0xff] %vm639_vm7, %v1295_v33 }
 0x331   : > { %1696 = shalt.err (!%p1693_p5)
}
 0x332   : > { %s1697_s18 = scalar_lea.hbm %s2321_s14, 256  ;;  %s1701_s27 = scalar_lea.hbm %s2377_s6, 512 }
 0x333   : > { %p1698_p6 = scmp.ne.s32.totalorder %s2321_s14, %s1697_s18  ;;  %p1702_p10 = scmp.lt.s32.totalorder %s2321_s14, %s2377_s6 }
 0x334   : > { %p1703_p11 = scmp.lt.s32.totalorder %s1701_s27, %s1697_s18 }
 0x335   : > { %p1699_p7 = pnand %p1698_p6, %p1853_p4 }
 0x336   : > { %p1704_p12 = por %p1703_p11, %p1702_p10 }
 0x337   : > { %p1700_p9 = pneg %p1699_p7 }
 0x339   : > { %p1705_p13 = pnand %p1704_p12, %p1700_p9 }
 0x33b   : > { %1708 = shalt.err (!%p1705_p13)
}
 0x33c   : > { %s1776_s12 = smov 128   ;;  %s1777_s13 = smov 8  }
 0x33d   : > { %1514 = dma.vmem_to_hbm [thread:$0]  (%p1853_p4), %s2323_s8, 256, %s2321_s14, %s2326_s24, %s1776_s12, %s1776_s12, %s1777_s13  }
 0x33e PF: > { %p1520_p0 = scmp.ge.s32.totalorder %s1759_s26, 2  ;;  %s1329_s11 = sand.u32 1, %s1739_s21  }
 0x33f   : > { %s1330_s15 = scalar_lea.sflag [#allocation3], %s1329_s11 }
 0x340   : > { %p1517_p1 = pnand %p1520_p0, %p1860_p8 }
 0x342   : > { %p1518_p2 = pneg %p1517_p1 }
 0x344   : > { %1734 = dma.done.wait (%p1518_p2), %s1330_s15, 256  }
 0x345   : > { %1736 = vsyncadd (%p1518_p2), %s1330_s15, 4294967040  ;;  %s19_s26 = sadd.s32 1, %s1759_s26   ;;  %s2384_s21 = smov %s1743_s22 }
 0x346   : > { %p16_p3 = scmp.ge.s32.totalorder %s19_s26, 4   ;;  %s2385_s22 = smov %s1747_s23 }
 0x347   : > { %s2386_s23 = smov %s1866_s10  ;;  %s2387_s24 = smov %s1755_s25 }
 0x348   : > { %s2388_s25 = smov %s2390_s29  ;;  %18 = sbr.rel (!%p16_p3) target bundleno = 4 (0x4), region = 88 }
 0x34d   :  { %1335 = vsyncpa [#allocation3], 1 }
 0x34e   :  { %1337 = vsyncpa [#allocation3 + $0x1], 1 }

</bundles_post_ra>
